<compile_context>
chip_gen: v7x
topology: tpu7x:2x2x1
jax: 0.10.0
libtpu: 0.0.40
codegen_flags: <defaults>
</compile_context>

<pallas_src>
import functools
import math

import jax
import jax.numpy as jnp
from jax.experimental import pallas as pl
from jax.experimental.pallas import tpu as pltpu

LN_EPS = 1e-5      # PyTorch LayerNorm / TransformerEncoderLayer default
OUT_PAD = 128      # lane-dense padded width for the two head outputs


# ----------------------------- small helpers (usable inside kernels) ---------

def _layer_norm(x, w, b):
    mu = jnp.mean(x, axis=-1, keepdims=True)
    var = jnp.mean(jnp.square(x - mu), axis=-1, keepdims=True)
    return (x - mu) * jax.lax.rsqrt(var + LN_EPS) * w + b


def _silu(x):
    return x * jax.nn.sigmoid(x)


# ----------------------------- fused Pallas kernel ----------------------------

def transformer_kernel(x_ref, kbias_ref, mask_ref,
                       ln1w_ref, ln1b_ref, wqkv_ref, bqkv_ref, wo_ref, bo_ref,
                       ln2w_ref, ln2b_ref, w1_ref, b1_ref, w2_ref, b2_ref,
                       hlnw_ref, hlnb_ref, wc_ref, wa1_ref, ba1_ref,
                       wa2_ref, ba2_ref,
                       coord_ref, logit_ref,
                       h_vmem, *, num_heads, batch, seq_len):
    """grid = (num_layers,).  Whole-batch hidden state resident in VMEM."""
    l = pl.program_id(0)
    M, H = h_vmem.shape                       # M = batch * seq_len
    B, S, nh = batch, seq_len, num_heads
    dh = H // nh
    scale = 1.0 / math.sqrt(dh)
    bf16, f32 = jnp.bfloat16, jnp.float32

    @pl.when(l == 0)
    def _():
        h_vmem[...] = x_ref[...].astype(f32)  # load embedded tokens (streamed bf16)

    x = h_vmem[...]                           # (M, H) f32 residual stream

    # --- self-attention block (pre-norm), batched over (B * nh) on the MXU ---
    xn = _layer_norm(x, ln1w_ref[...], ln1b_ref[...])
    qkv = jnp.dot(xn.astype(bf16), wqkv_ref[...],
                  preferred_element_type=f32) + bqkv_ref[...]       # (M, 3H) f32

    # Per-(batch, head) tiles, b-major ordering g = b*nh + h.
    # TODO(synk): for large B*nh this unrolled slice/stack should be replaced
    # by a flash-style relayout / kv-tiled inner loop.
    def to_heads(off, sc=None):
        sl = [qkv[b * S:(b + 1) * S, off + h * dh: off + (h + 1) * dh]
              for b in range(B) for h in range(nh)]
        a = jnp.stack(sl, axis=0)                                   # (B*nh, S, dh) f32
        if sc is not None:
            a = a * sc
        return a.astype(bf16)

    qh = to_heads(0, scale)          # 1/sqrt(dh) folded into q (not the S^2 scores)
    kh = to_heads(H)
    vh = to_heads(2 * H)

    s = jnp.einsum("gqd,gkd->gqk", qh, kh,
                   preferred_element_type=f32)                      # (B*nh, S, S)
    s = s + kbias_ref[...]                       # additive key-padding bias
    s = s - jnp.max(s, axis=-1, keepdims=True)   # f32 softmax
    p = jnp.exp(s)
    p = p * pl.reciprocal(jnp.sum(p, axis=-1, keepdims=True), approx=False)
    ctx = jnp.einsum("gqk,gkd->gqd", p.astype(bf16), vh,
                     preferred_element_type=f32)                    # (B*nh, S, dh)

    # Re-assemble (M, H) context so the output projection keeps K = H.
    ctx_full = jnp.concatenate(
        [jnp.concatenate([ctx[b * nh + h] for h in range(nh)], axis=-1)
         for b in range(B)], axis=0)                                # (M, H)

    attn = jnp.dot(ctx_full.astype(bf16), wo_ref[...],
                   preferred_element_type=f32) + bo_ref[...]
    x = x + attn

    # --- feed-forward block (pre-norm, SiLU; elementwise math in f32) ---
    xn2 = _layer_norm(x, ln2w_ref[...], ln2b_ref[...])
    h1 = _silu(jnp.dot(xn2.astype(bf16), w1_ref[...],
                       preferred_element_type=f32) + b1_ref[...])
    h2 = jnp.dot(h1.astype(bf16), w2_ref[...],
                 preferred_element_type=f32) + b2_ref[...]
    x = x + h2
    h_vmem[...] = x

    # --- fused output heads, only on the last layer step ---
    @pl.when(l == pl.num_programs(0) - 1)
    def _():
        hm = x * mask_ref[...]                   # h_out * real_mask
        hn = _layer_norm(hm, hlnw_ref[...], hlnb_ref[...])
        coord_ref[...] = jnp.dot(hn.astype(bf16), wc_ref[...],
                                 preferred_element_type=f32)        # (M, 128)
        a = _silu(jnp.dot(hm.astype(bf16), wa1_ref[...],
                          preferred_element_type=f32) + ba1_ref[...])
        logit_ref[...] = jnp.dot(a.astype(bf16), wa2_ref[...],
                                 preferred_element_type=f32) + ba2_ref[...]


# ----------------------------- pallas_call wrapper -----------------------------

_LAYER_KEYS = ("ln1_w", "ln1_b", "wqkv", "bqkv", "wo", "bo",
               "ln2_w", "ln2_b", "w1", "b1", "w2", "b2")
_HEAD_KEYS = ("head_ln_w", "head_ln_b", "w_coord",
              "w_atom1", "b_atom1", "w_atom2", "b_atom2")


def forward_pallas(params, coords, atomics, padding_mask, t, num_heads,
                   spatial_dim, atom_dim):
    h_in, kbias, real_mask = embed_inputs(params, coords, atomics, padding_mask, t)
    B, S, H = h_in.shape
    L = params["wqkv"].shape[0]
    M = B * S

    x_flat = h_in.reshape(M, H).astype(jnp.bfloat16)        # bf16 input streaming
    kbias_hm = jnp.repeat(kbias, num_heads, axis=0)          # (B*nh, 1, S), b-major
    mask_flat = real_mask.reshape(M, 1)

    layer_ws = [params[k] for k in _LAYER_KEYS]
    head_ws = [params[k] for k in _HEAD_KEYS]

    def layer_spec(arr):      # (L, x, y): per-layer weights, streamed once over l
        return pl.BlockSpec((pl.Squeezed(),) + arr.shape[1:], lambda l: (l, 0, 0))

    def const_spec(arr):      # resident / unchanged across the whole grid
        return pl.BlockSpec(arr.shape, lambda l: (0,) * arr.ndim)

    in_specs = ([const_spec(x_flat), const_spec(kbias_hm), const_spec(mask_flat)]
                + [layer_spec(w) for w in layer_ws]
                + [const_spec(w) for w in head_ws])
    out_specs = (pl.BlockSpec((M, OUT_PAD), lambda l: (0, 0)),
                 pl.BlockSpec((M, OUT_PAD), lambda l: (0, 0)))
    out_shape = (jax.ShapeDtypeStruct((M, OUT_PAD), jnp.float32),
                 jax.ShapeDtypeStruct((M, OUT_PAD), jnp.float32))

    coord_pad, logit_pad = pl.pallas_call(
        functools.partial(transformer_kernel, num_heads=num_heads,
                          batch=B, seq_len=S),
        out_shape=out_shape,
        grid=(L,),
        in_specs=in_specs,
        out_specs=out_specs,
        scratch_shapes=[pltpu.VMEM((M, H), jnp.float32)],
        compiler_params=pltpu.CompilerParams(
            dimension_semantics=("arbitrary",),
            # 48 MiB: leaves headroom on v7x's 64 MiB physical VMEM, fine on v5e/v6e.
            vmem_limit_bytes=48 * 1024 * 1024),
    )(x_flat, kbias_hm, mask_flat, *layer_ws, *head_ws)

    # Slice the lane-dense padded slabs back to the real output widths.
    coord_pad = coord_pad.reshape(B, S, OUT_PAD)
    logit_pad = logit_pad.reshape(B, S, OUT_PAD)
    return coord_pad[..., :spatial_dim], logit_pad[..., :atom_dim]


# ----------------------------- glue (plain JAX) --------------------------------

def sinusoid_encoding(seq_len, dim):
    pos = jnp.arange(seq_len, dtype=jnp.float32)[:, None]
    i = jnp.arange(0, dim, 2, dtype=jnp.float32)
    div = jnp.exp(-math.log(10000.0) * i / dim)
    ang = pos * div
    return jnp.stack([jnp.sin(ang), jnp.cos(ang)], axis=-1).reshape(seq_len, dim)


def time_fourier_encoding(t, dim, max_len=200):
    # TODO(synk): exact TimeFourierEncoding source not in the snippet; using the
    # standard continuous sinusoid encoding of t * max_len.
    pos = (t * max_len)[:, None]
    i = jnp.arange(0, dim, 2, dtype=jnp.float32)
    div = jnp.exp(-math.log(10000.0) * i / dim)
    ang = pos * div
    return jnp.stack([jnp.sin(ang), jnp.cos(ang)], axis=-1).reshape(t.shape[0], dim)


def embed_inputs(params, coords, atomics, padding_mask, t):
    B, S, _ = coords.shape
    H = params["linear_embed_w"].shape[1]
    real_mask = (1.0 - padding_mask.astype(jnp.float32))[..., None]        # (B,S,1)
    embed_coords = coords @ params["linear_embed_w"]                       # (B,S,H)
    # TODO(synk): argmax + embedding-table gather kept in plain JAX (no clean Pallas gather here).
    embed_atoms = params["atom_embed"][jnp.argmax(atomics, axis=-1)]       # (B,S,H)
    embed_posenc = sinusoid_encoding(S, H)[None]                           # (1,S,H)
    embed_time = time_fourier_encoding(t, H)[:, None, :]                   # (B,1,H)
    h_in = embed_coords + embed_atoms + embed_posenc + embed_time
    h_in = h_in * real_mask
    kbias = jnp.where(padding_mask, -1e9, 0.0).astype(jnp.float32)[:, None, :]  # (B,1,S)
    return h_in, kbias, real_mask


# ----------------------------- pure-JAX reference ------------------------------
# Mirrors the kernel numerics (bf16 input stream, bf16 matmul operands, f32
# accumulation / elementwise) so the correctness check is tight.

def forward_ref(params, coords, atomics, padding_mask, t, num_heads,
                spatial_dim, atom_dim):
    bf16, f32 = jnp.bfloat16, jnp.float32
    h, kbias, real_mask = embed_inputs(params, coords, atomics, padding_mask, t)
    h = h.astype(bf16).astype(f32)           # mirrors bf16 input streaming
    B, S, H = h.shape
    L = params["wqkv"].shape[0]
    nh, dh = num_heads, H // num_heads
    scale = 1.0 / math.sqrt(dh)
    for l in range(L):
        xn = _layer_norm(h, params["ln1_w"][l], params["ln1_b"][l])
        qkv = jnp.einsum("bsh,hf->bsf", xn.astype(bf16), params["wqkv"][l],
                         preferred_element_type=f32) + params["bqkv"][l]
        q = qkv[..., 0:H].reshape(B, S, nh, dh).transpose(0, 2, 1, 3).astype(bf16)
        k = qkv[..., H:2 * H].reshape(B, S, nh, dh).transpose(0, 2, 1, 3).astype(bf16)
        v = qkv[..., 2 * H:3 * H].reshape(B, S, nh, dh).transpose(0, 2, 1, 3).astype(bf16)
        s = jnp.einsum("bhqd,bhkd->bhqk", q, k, preferred_element_type=f32) * scale
        s = s + kbias[:, None, :, :]
        p = jax.nn.softmax(s, axis=-1)
        ctx = jnp.einsum("bhqk,bhkd->bhqd", p.astype(bf16), v,
                         preferred_element_type=f32)
        ctx = ctx.transpose(0, 2, 1, 3).reshape(B, S, H)
        h = h + jnp.einsum("bsh,hf->bsf", ctx.astype(bf16), params["wo"][l],
                           preferred_element_type=f32) + params["bo"][l]
        xn2 = _layer_norm(h, params["ln2_w"][l], params["ln2_b"][l])
        h1 = _silu(jnp.einsum("bsh,hf->bsf", xn2.astype(bf16), params["w1"][l],
                              preferred_element_type=f32) + params["b1"][l])
        h = h + jnp.einsum("bsf,fh->bsh", h1.astype(bf16), params["w2"][l],
                           preferred_element_type=f32) + params["b2"][l]
    hm = h * real_mask
    hn = _layer_norm(hm, params["head_ln_w"], params["head_ln_b"])
    coords_out = jnp.einsum("bsh,hf->bsf", hn.astype(bf16), params["w_coord"],
                            preferred_element_type=f32)[..., :spatial_dim]
    a = _silu(jnp.einsum("bsh,hf->bsf", hm.astype(bf16), params["w_atom1"],
                         preferred_element_type=f32) + params["b_atom1"])
    logits = (jnp.einsum("bsh,hf->bsf", a.astype(bf16), params["w_atom2"],
                         preferred_element_type=f32) + params["b_atom2"])[..., :atom_dim]
    return coords_out, logits


# ----------------------------- deterministic init ------------------------------

def init_params(key, spatial_dim, atom_dim, hidden_dim, num_layers):
    H, L = hidden_dim, num_layers
    bf16, f32 = jnp.bfloat16, jnp.float32
    keys = iter(jax.random.split(key, 32))

    def w(shape, dtype=f32, scale=0.05):
        return (scale * jax.random.normal(next(keys), shape, f32)).astype(dtype)

    def pad_cols(a, width):
        return jnp.pad(a, ((0, 0), (0, width - a.shape[-1])))

    params = {
        # input embeddings (plain JAX, f32)
        "linear_embed_w": w((spatial_dim, H)),       # nn.Linear(spatial,H,bias=False), pre-transposed
        "atom_embed": w((atom_dim, H)),              # nn.Embedding table
        # stacked encoder-layer weights: leading dim = layer, matmul weights bf16
        "ln1_w": jnp.ones((L, 1, H), f32), "ln1_b": jnp.zeros((L, 1, H), f32),
        "wqkv": w((L, H, 3 * H), bf16), "bqkv": w((L, 1, 3 * H)),
        "wo": w((L, H, H), bf16), "bo": w((L, 1, H)),
        "ln2_w": jnp.ones((L, 1, H), f32), "ln2_b": jnp.zeros((L, 1, H), f32),
        "w1": w((L, H, 4 * H), bf16), "b1": w((L, 1, 4 * H)),
        "w2": w((L, 4 * H, H), bf16), "b2": w((L, 1, H)),
        # output heads (zero-padded to OUT_PAD lanes for dense stores)
        "head_ln_w": jnp.ones((1, H), f32), "head_ln_b": jnp.zeros((1, H), f32),
        "w_coord": pad_cols(w((H, spatial_dim)), OUT_PAD).astype(bf16),   # out_coord (bias=False)
        "w_atom1": w((H, H), bf16), "b_atom1": w((1, H)),
        "w_atom2": pad_cols(w((H, atom_dim)), OUT_PAD).astype(bf16),
        "b_atom2": pad_cols(w((1, atom_dim)), OUT_PAD),
    }
    return params


# ----------------------------- main --------------------------------------------

if __name__ == "__main__":
    B, S = 2, 8
    spatial_dim, atom_dim, hidden_dim = 3, 8, 32
    num_heads, num_layers = 4, 2

    key = jax.random.PRNGKey(0)
    k1, k2, k3, kp = jax.random.split(key, 4)
    coords = jax.random.normal(k1, (B, S, spatial_dim), jnp.float32)
    atomics = jax.nn.one_hot(jax.random.randint(k2, (B, S), 0, atom_dim),
                             atom_dim, dtype=jnp.float32)
    padding_mask = jnp.zeros((B, S), jnp.bool_).at[1, -2:].set(True)  # True = padding
    t = jax.random.uniform(k3, (B,), jnp.float32)

    params = init_params(kp, spatial_dim, atom_dim, hidden_dim, num_layers)

    coords_out, atom_logits = forward_pallas(params, coords, atomics, padding_mask,
                                             t, num_heads, spatial_dim, atom_dim)
    jax.block_until_ready((coords_out, atom_logits))

    ref_coords, ref_logits = forward_ref(params, coords, atomics, padding_mask,
                                         t, num_heads, spatial_dim, atom_dim)
    assert coords_out.shape == (B, S, spatial_dim)
    assert atom_logits.shape == (B, S, atom_dim)
    assert jnp.allclose(coords_out, ref_coords, atol=2e-2, rtol=2e-2), \
        float(jnp.max(jnp.abs(coords_out - ref_coords)))
    assert jnp.allclose(atom_logits, ref_logits, atol=2e-2, rtol=2e-2), \
        float(jnp.max(jnp.abs(atom_logits - ref_logits)))

    print("KERNEL_OK")
</pallas_src>

<mosaic_0001>
module attributes {stable_mosaic.version = 11 : i64} {
  func.func @transformer_kernel(%arg0: i32, %arg1: memref<16x32xbf16, #tpu.memory_space<vmem>>, %arg2: memref<8x1x8xf32, #tpu.memory_space<vmem>>, %arg3: memref<16x1xf32, #tpu.memory_space<vmem>>, %arg4: memref<1x1x32xf32, #tpu.memory_space<vmem>>, %arg5: memref<1x1x32xf32, #tpu.memory_space<vmem>>, %arg6: memref<1x32x96xbf16, #tpu.memory_space<vmem>>, %arg7: memref<1x1x96xf32, #tpu.memory_space<vmem>>, %arg8: memref<1x32x32xbf16, #tpu.memory_space<vmem>>, %arg9: memref<1x1x32xf32, #tpu.memory_space<vmem>>, %arg10: memref<1x1x32xf32, #tpu.memory_space<vmem>>, %arg11: memref<1x1x32xf32, #tpu.memory_space<vmem>>, %arg12: memref<1x32x128xbf16, #tpu.memory_space<vmem>>, %arg13: memref<1x1x128xf32, #tpu.memory_space<vmem>>, %arg14: memref<1x128x32xbf16, #tpu.memory_space<vmem>>, %arg15: memref<1x1x32xf32, #tpu.memory_space<vmem>>, %arg16: memref<1x32xf32, #tpu.memory_space<vmem>>, %arg17: memref<1x32xf32, #tpu.memory_space<vmem>>, %arg18: memref<32x128xbf16, #tpu.memory_space<vmem>>, %arg19: memref<32x32xbf16, #tpu.memory_space<vmem>>, %arg20: memref<1x32xf32, #tpu.memory_space<vmem>>, %arg21: memref<32x128xbf16, #tpu.memory_space<vmem>>, %arg22: memref<1x128xf32, #tpu.memory_space<vmem>>, %arg23: memref<16x128xf32, #tpu.memory_space<vmem>>, %arg24: memref<16x128xf32, #tpu.memory_space<vmem>>, %arg25: memref<16x32xf32, #tpu.memory_space<vmem>>) attributes {dimension_semantics = [#tpu.dimension_semantics<arbitrary>], iteration_bounds = array<i64: 2>, scalar_prefetch = 0 : i64, scratch_operands = 1 : i64, tpu.core_type = #tpu.core_type<tc>, window_params = [{pipeline_mode = #tpu.pipeline_mode<synchronous>, transform_indices = @transform_0, window_bounds = array<i64: 16, 32>}, {pipeline_mode = #tpu.pipeline_mode<synchronous>, transform_indices = @transform_1, window_bounds = array<i64: 8, 1, 8>}, {pipeline_mode = #tpu.pipeline_mode<synchronous>, transform_indices = @transform_2, window_bounds = array<i64: 16, 1>}, {transform_indices = @transform_3, window_bounds = array<i64: 1, 1, 32>}, {transform_indices = @transform_4, window_bounds = array<i64: 1, 1, 32>}, {transform_indices = @transform_5, window_bounds = array<i64: 1, 32, 96>}, {transform_indices = @transform_6, window_bounds = array<i64: 1, 1, 96>}, {transform_indices = @transform_7, window_bounds = array<i64: 1, 32, 32>}, {transform_indices = @transform_8, window_bounds = array<i64: 1, 1, 32>}, {transform_indices = @transform_9, window_bounds = array<i64: 1, 1, 32>}, {transform_indices = @transform_10, window_bounds = array<i64: 1, 1, 32>}, {transform_indices = @transform_11, window_bounds = array<i64: 1, 32, 128>}, {transform_indices = @transform_12, window_bounds = array<i64: 1, 1, 128>}, {transform_indices = @transform_13, window_bounds = array<i64: 1, 128, 32>}, {transform_indices = @transform_14, window_bounds = array<i64: 1, 1, 32>}, {pipeline_mode = #tpu.pipeline_mode<synchronous>, transform_indices = @transform_15, window_bounds = array<i64: 1, 32>}, {pipeline_mode = #tpu.pipeline_mode<synchronous>, transform_indices = @transform_16, window_bounds = array<i64: 1, 32>}, {pipeline_mode = #tpu.pipeline_mode<synchronous>, transform_indices = @transform_17, window_bounds = array<i64: 32, 128>}, {pipeline_mode = #tpu.pipeline_mode<synchronous>, transform_indices = @transform_18, window_bounds = array<i64: 32, 32>}, {pipeline_mode = #tpu.pipeline_mode<synchronous>, transform_indices = @transform_19, window_bounds = array<i64: 1, 32>}, {pipeline_mode = #tpu.pipeline_mode<synchronous>, transform_indices = @transform_20, window_bounds = array<i64: 32, 128>}, {pipeline_mode = #tpu.pipeline_mode<synchronous>, transform_indices = @transform_21, window_bounds = array<i64: 1, 128>}, {pipeline_mode = #tpu.pipeline_mode<synchronous>, transform_indices = @transform_22, window_bounds = array<i64: 16, 128>}, {pipeline_mode = #tpu.pipeline_mode<synchronous>, transform_indices = @transform_23, window_bounds = array<i64: 16, 128>}]} {
    %c0_i32 = arith.constant 0 : i32
    %0 = arith.cmpi eq, %arg0, %c0_i32 : i32
    %1 = arith.extui %0 : i1 to i32
    %c0_i32_0 = arith.constant 0 : i32
    %2 = arith.cmpi ne, %1, %c0_i32_0 : i32
    scf.if %2 {
      %c0_63 = arith.constant 0 : index
      %c0_64 = arith.constant 0 : index
      %191 = vector.load %arg1[%c0_63, %c0_64] : memref<16x32xbf16, #tpu.memory_space<vmem>>, vector<16x32xbf16>
      %192 = arith.extf %191 : vector<16x32xbf16> to vector<16x32xf32>
      %c0_65 = arith.constant 0 : index
      %c0_66 = arith.constant 0 : index
      %193 = vector.load %arg25[%c0_65, %c0_66] : memref<16x32xf32, #tpu.memory_space<vmem>>, vector<16x32xf32>
      tpu.vector_store %arg25[%c0_65, %c0_66], %192 {strides = array<i32>} : memref<16x32xf32, #tpu.memory_space<vmem>>, vector<16x32xf32>,
    } else {
    }
    %c0 = arith.constant 0 : index
    %c0_1 = arith.constant 0 : index
    %3 = vector.load %arg25[%c0, %c0_1] : memref<16x32xf32, #tpu.memory_space<vmem>>, vector<16x32xf32>
    %c0_2 = arith.constant 0 : index
    %c0_3 = arith.constant 0 : index
    %c0_4 = arith.constant 0 : index
    %4 = vector.load %arg4[%c0_2, %c0_3, %c0_4] : memref<1x1x32xf32, #tpu.memory_space<vmem>>, vector<1x1x32xf32>
    %5 = vector.shape_cast %4 : vector<1x1x32xf32> to vector<1x32xf32>
    %c0_5 = arith.constant 0 : index
    %c0_6 = arith.constant 0 : index
    %c0_7 = arith.constant 0 : index
    %6 = vector.load %arg5[%c0_5, %c0_6, %c0_7] : memref<1x1x32xf32, #tpu.memory_space<vmem>>, vector<1x1x32xf32>
    %7 = vector.shape_cast %6 : vector<1x1x32xf32> to vector<1x32xf32>
    %cst = arith.constant dense<0.000000e+00> : vector<16xf32>
    %8 = vector.multi_reduction <add>, %3, %cst [1] : vector<16x32xf32> to vector<16xf32>
    %9 = vector.shape_cast %8 : vector<16xf32> to vector<16x1xf32>
    %cst_8 = arith.constant 3.200000e+01 : f32
    %10 = vector.broadcast %cst_8 : f32 to vector<16x1xf32>
    %11 = arith.divf %9, %10 : vector<16x1xf32>
    %12 = vector.broadcast %11 : vector<16x1xf32> to vector<16x32xf32>
    %13 = arith.subf %3, %12 : vector<16x32xf32>
    %14 = arith.mulf %13, %13 : vector<16x32xf32>
    %cst_9 = arith.constant dense<0.000000e+00> : vector<16xf32>
    %15 = vector.multi_reduction <add>, %14, %cst_9 [1] : vector<16x32xf32> to vector<16xf32>
    %16 = vector.shape_cast %15 : vector<16xf32> to vector<16x1xf32>
    %cst_10 = arith.constant 3.200000e+01 : f32
    %17 = vector.broadcast %cst_10 : f32 to vector<16x1xf32>
    %18 = arith.divf %16, %17 : vector<16x1xf32>
    %19 = vector.broadcast %11 : vector<16x1xf32> to vector<16x32xf32>
    %20 = arith.subf %3, %19 : vector<16x32xf32>
    %cst_11 = arith.constant 9.99999974E-6 : f32
    %21 = vector.broadcast %cst_11 : f32 to vector<16x1xf32>
    %22 = arith.addf %18, %21 : vector<16x1xf32>
    %23 = math.rsqrt %22 : vector<16x1xf32>
    %24 = vector.broadcast %23 : vector<16x1xf32> to vector<16x32xf32>
    %25 = arith.mulf %20, %24 : vector<16x32xf32>
    %26 = vector.broadcast %5 : vector<1x32xf32> to vector<16x32xf32>
    %27 = arith.mulf %25, %26 : vector<16x32xf32>
    %28 = vector.broadcast %7 : vector<1x32xf32> to vector<16x32xf32>
    %29 = arith.addf %27, %28 : vector<16x32xf32>
    %30 = arith.truncf %29 : vector<16x32xf32> to vector<16x32xbf16>
    %c0_12 = arith.constant 0 : index
    %c0_13 = arith.constant 0 : index
    %c0_14 = arith.constant 0 : index
    %31 = vector.load %arg6[%c0_12, %c0_13, %c0_14] : memref<1x32x96xbf16, #tpu.memory_space<vmem>>, vector<1x32x96xbf16>
    %32 = vector.shape_cast %31 : vector<1x32x96xbf16> to vector<32x96xbf16>
    %cst_15 = arith.constant dense<0.000000e+00> : vector<16x96xf32>
    %33 = tpu.matmul %30, %32, %cst_15 {dimension_numbers = #tpu.dot_dimension_numbers<[1], [0], [0], [1], [0, 0, 1, 1], [], []>} : vector<16x32xbf16>, vector<32x96xbf16>, vector<16x96xf32> -> vector<16x96xf32>
    %c0_16 = arith.constant 0 : index
    %c0_17 = arith.constant 0 : index
    %c0_18 = arith.constant 0 : index
    %34 = vector.load %arg7[%c0_16, %c0_17, %c0_18] : memref<1x1x96xf32, #tpu.memory_space<vmem>>, vector<1x1x96xf32>
    %35 = vector.shape_cast %34 : vector<1x1x96xf32> to vector<1x96xf32>
    %36 = vector.broadcast %35 : vector<1x96xf32> to vector<16x96xf32>
    %37 = arith.addf %33, %36 : vector<16x96xf32>
    %38 = vector.extract_strided_slice %37 {offsets = [0, 0], sizes = [8, 8], strides = [1, 1]} : vector<16x96xf32> to vector<8x8xf32>
    %39 = vector.extract_strided_slice %37 {offsets = [0, 8], sizes = [8, 8], strides = [1, 1]} : vector<16x96xf32> to vector<8x8xf32>
    %40 = vector.extract_strided_slice %37 {offsets = [0, 16], sizes = [8, 8], strides = [1, 1]} : vector<16x96xf32> to vector<8x8xf32>
    %41 = vector.extract_strided_slice %37 {offsets = [0, 24], sizes = [8, 8], strides = [1, 1]} : vector<16x96xf32> to vector<8x8xf32>
    %42 = vector.extract_strided_slice %37 {offsets = [8, 0], sizes = [8, 8], strides = [1, 1]} : vector<16x96xf32> to vector<8x8xf32>
    %43 = vector.extract_strided_slice %37 {offsets = [8, 8], sizes = [8, 8], strides = [1, 1]} : vector<16x96xf32> to vector<8x8xf32>
    %44 = vector.extract_strided_slice %37 {offsets = [8, 16], sizes = [8, 8], strides = [1, 1]} : vector<16x96xf32> to vector<8x8xf32>
    %45 = vector.extract_strided_slice %37 {offsets = [8, 24], sizes = [8, 8], strides = [1, 1]} : vector<16x96xf32> to vector<8x8xf32>
    %46 = vector.shape_cast %38 : vector<8x8xf32> to vector<1x8x8xf32>
    %47 = vector.shape_cast %39 : vector<8x8xf32> to vector<1x8x8xf32>
    %48 = vector.shape_cast %40 : vector<8x8xf32> to vector<1x8x8xf32>
    %49 = vector.shape_cast %41 : vector<8x8xf32> to vector<1x8x8xf32>
    %50 = vector.shape_cast %42 : vector<8x8xf32> to vector<1x8x8xf32>
    %51 = vector.shape_cast %43 : vector<8x8xf32> to vector<1x8x8xf32>
    %52 = vector.shape_cast %44 : vector<8x8xf32> to vector<1x8x8xf32>
    %53 = vector.shape_cast %45 : vector<8x8xf32> to vector<1x8x8xf32>
    %54 = tpu.concatenate %46, %47, %48, %49, %50, %51, %52, %53 in 0 : vector<1x8x8xf32>, vector<1x8x8xf32>, vector<1x8x8xf32>, vector<1x8x8xf32>, vector<1x8x8xf32>, vector<1x8x8xf32>, vector<1x8x8xf32>, vector<1x8x8xf32> -> vector<8x8x8xf32>
    %cst_19 = arith.constant 0.353553385 : f32
    %55 = vector.broadcast %cst_19 : f32 to vector<8x8x8xf32>
    %56 = arith.mulf %54, %55 : vector<8x8x8xf32>
    %57 = arith.truncf %56 : vector<8x8x8xf32> to vector<8x8x8xbf16>
    %58 = vector.extract_strided_slice %37 {offsets = [0, 32], sizes = [8, 8], strides = [1, 1]} : vector<16x96xf32> to vector<8x8xf32>
    %59 = vector.extract_strided_slice %37 {offsets = [0, 40], sizes = [8, 8], strides = [1, 1]} : vector<16x96xf32> to vector<8x8xf32>
    %60 = vector.extract_strided_slice %37 {offsets = [0, 48], sizes = [8, 8], strides = [1, 1]} : vector<16x96xf32> to vector<8x8xf32>
    %61 = vector.extract_strided_slice %37 {offsets = [0, 56], sizes = [8, 8], strides = [1, 1]} : vector<16x96xf32> to vector<8x8xf32>
    %62 = vector.extract_strided_slice %37 {offsets = [8, 32], sizes = [8, 8], strides = [1, 1]} : vector<16x96xf32> to vector<8x8xf32>
    %63 = vector.extract_strided_slice %37 {offsets = [8, 40], sizes = [8, 8], strides = [1, 1]} : vector<16x96xf32> to vector<8x8xf32>
    %64 = vector.extract_strided_slice %37 {offsets = [8, 48], sizes = [8, 8], strides = [1, 1]} : vector<16x96xf32> to vector<8x8xf32>
    %65 = vector.extract_strided_slice %37 {offsets = [8, 56], sizes = [8, 8], strides = [1, 1]} : vector<16x96xf32> to vector<8x8xf32>
    %66 = vector.shape_cast %58 : vector<8x8xf32> to vector<1x8x8xf32>
    %67 = vector.shape_cast %59 : vector<8x8xf32> to vector<1x8x8xf32>
    %68 = vector.shape_cast %60 : vector<8x8xf32> to vector<1x8x8xf32>
    %69 = vector.shape_cast %61 : vector<8x8xf32> to vector<1x8x8xf32>
    %70 = vector.shape_cast %62 : vector<8x8xf32> to vector<1x8x8xf32>
    %71 = vector.shape_cast %63 : vector<8x8xf32> to vector<1x8x8xf32>
    %72 = vector.shape_cast %64 : vector<8x8xf32> to vector<1x8x8xf32>
    %73 = vector.shape_cast %65 : vector<8x8xf32> to vector<1x8x8xf32>
    %74 = tpu.concatenate %66, %67, %68, %69, %70, %71, %72, %73 in 0 : vector<1x8x8xf32>, vector<1x8x8xf32>, vector<1x8x8xf32>, vector<1x8x8xf32>, vector<1x8x8xf32>, vector<1x8x8xf32>, vector<1x8x8xf32>, vector<1x8x8xf32> -> vector<8x8x8xf32>
    %75 = arith.truncf %74 : vector<8x8x8xf32> to vector<8x8x8xbf16>
    %76 = vector.extract_strided_slice %37 {offsets = [0, 64], sizes = [8, 8], strides = [1, 1]} : vector<16x96xf32> to vector<8x8xf32>
    %77 = vector.extract_strided_slice %37 {offsets = [0, 72], sizes = [8, 8], strides = [1, 1]} : vector<16x96xf32> to vector<8x8xf32>
    %78 = vector.extract_strided_slice %37 {offsets = [0, 80], sizes = [8, 8], strides = [1, 1]} : vector<16x96xf32> to vector<8x8xf32>
    %79 = vector.extract_strided_slice %37 {offsets = [0, 88], sizes = [8, 8], strides = [1, 1]} : vector<16x96xf32> to vector<8x8xf32>
    %80 = vector.extract_strided_slice %37 {offsets = [8, 64], sizes = [8, 8], strides = [1, 1]} : vector<16x96xf32> to vector<8x8xf32>
    %81 = vector.extract_strided_slice %37 {offsets = [8, 72], sizes = [8, 8], strides = [1, 1]} : vector<16x96xf32> to vector<8x8xf32>
    %82 = vector.extract_strided_slice %37 {offsets = [8, 80], sizes = [8, 8], strides = [1, 1]} : vector<16x96xf32> to vector<8x8xf32>
    %83 = vector.extract_strided_slice %37 {offsets = [8, 88], sizes = [8, 8], strides = [1, 1]} : vector<16x96xf32> to vector<8x8xf32>
    %84 = vector.shape_cast %76 : vector<8x8xf32> to vector<1x8x8xf32>
    %85 = vector.shape_cast %77 : vector<8x8xf32> to vector<1x8x8xf32>
    %86 = vector.shape_cast %78 : vector<8x8xf32> to vector<1x8x8xf32>
    %87 = vector.shape_cast %79 : vector<8x8xf32> to vector<1x8x8xf32>
    %88 = vector.shape_cast %80 : vector<8x8xf32> to vector<1x8x8xf32>
    %89 = vector.shape_cast %81 : vector<8x8xf32> to vector<1x8x8xf32>
    %90 = vector.shape_cast %82 : vector<8x8xf32> to vector<1x8x8xf32>
    %91 = vector.shape_cast %83 : vector<8x8xf32> to vector<1x8x8xf32>
    %92 = tpu.concatenate %84, %85, %86, %87, %88, %89, %90, %91 in 0 : vector<1x8x8xf32>, vector<1x8x8xf32>, vector<1x8x8xf32>, vector<1x8x8xf32>, vector<1x8x8xf32>, vector<1x8x8xf32>, vector<1x8x8xf32>, vector<1x8x8xf32> -> vector<8x8x8xf32>
    %93 = arith.truncf %92 : vector<8x8x8xf32> to vector<8x8x8xbf16>
    "tpu.trace_start"() <{level = 10 : i32, message = "gqd,gkd->gqk"}> : () -> ()
    %cst_20 = arith.constant dense<0.000000e+00> : vector<8x8x8xf32>
    %94 = tpu.matmul %57, %75, %cst_20 {dimension_numbers = #tpu.dot_dimension_numbers<[2], [2], [1], [1], [0, 0, 0, 1, 1, 1], [0], [0]>} : vector<8x8x8xbf16>, vector<8x8x8xbf16>, vector<8x8x8xf32> -> vector<8x8x8xf32>
    "tpu.trace_stop"() : () -> ()
    %c0_21 = arith.constant 0 : index
    %c0_22 = arith.constant 0 : index
    %c0_23 = arith.constant 0 : index
    %95 = vector.load %arg2[%c0_21, %c0_22, %c0_23] : memref<8x1x8xf32, #tpu.memory_space<vmem>>, vector<8x1x8xf32>
    %96 = vector.broadcast %95 : vector<8x1x8xf32> to vector<8x8x8xf32>
    %97 = arith.addf %94, %96 : vector<8x8x8xf32>
    %cst_24 = arith.constant dense<0xFF800000> : vector<8x8xf32>
    %98 = vector.multi_reduction <maximumf>, %97, %cst_24 [2] : vector<8x8x8xf32> to vector<8x8xf32>
    %99 = vector.shape_cast %98 : vector<8x8xf32> to vector<8x8x1xf32>
    %100 = vector.broadcast %99 : vector<8x8x1xf32> to vector<8x8x8xf32>
    %101 = arith.subf %97, %100 : vector<8x8x8xf32>
    %102 = math.exp %101 : vector<8x8x8xf32>
    %cst_25 = arith.constant dense<0.000000e+00> : vector<8x8xf32>
    %103 = vector.multi_reduction <add>, %102, %cst_25 [2] : vector<8x8x8xf32> to vector<8x8xf32>
    %104 = vector.shape_cast %103 : vector<8x8xf32> to vector<8x8x1xf32>
    %105 = tpu.reciprocal %104 : vector<8x8x1xf32> -> vector<8x8x1xf32>
    %106 = vector.broadcast %105 : vector<8x8x1xf32> to vector<8x8x8xf32>
    %107 = arith.mulf %102, %106 : vector<8x8x8xf32>
    %108 = arith.truncf %107 : vector<8x8x8xf32> to vector<8x8x8xbf16>
    "tpu.trace_start"() <{level = 10 : i32, message = "gqk,gkd->gqd"}> : () -> ()
    %cst_26 = arith.constant dense<0.000000e+00> : vector<8x8x8xf32>
    %109 = tpu.matmul %108, %93, %cst_26 {dimension_numbers = #tpu.dot_dimension_numbers<[2], [1], [1], [2], [0, 0, 0, 1, 1, 2], [0], [0]>} : vector<8x8x8xbf16>, vector<8x8x8xbf16>, vector<8x8x8xf32> -> vector<8x8x8xf32>
    "tpu.trace_stop"() : () -> ()
    %110 = vector.extract_strided_slice %109 {offsets = [0, 0, 0], sizes = [1, 8, 8], strides = [1, 1, 1]} : vector<8x8x8xf32> to vector<1x8x8xf32>
    %111 = vector.shape_cast %110 : vector<1x8x8xf32> to vector<8x8xf32>
    %112 = vector.extract_strided_slice %109 {offsets = [1, 0, 0], sizes = [1, 8, 8], strides = [1, 1, 1]} : vector<8x8x8xf32> to vector<1x8x8xf32>
    %113 = vector.shape_cast %112 : vector<1x8x8xf32> to vector<8x8xf32>
    %114 = vector.extract_strided_slice %109 {offsets = [2, 0, 0], sizes = [1, 8, 8], strides = [1, 1, 1]} : vector<8x8x8xf32> to vector<1x8x8xf32>
    %115 = vector.shape_cast %114 : vector<1x8x8xf32> to vector<8x8xf32>
    %116 = vector.extract_strided_slice %109 {offsets = [3, 0, 0], sizes = [1, 8, 8], strides = [1, 1, 1]} : vector<8x8x8xf32> to vector<1x8x8xf32>
    %117 = vector.shape_cast %116 : vector<1x8x8xf32> to vector<8x8xf32>
    %118 = tpu.concatenate %111, %113, %115, %117 in 1 : vector<8x8xf32>, vector<8x8xf32>, vector<8x8xf32>, vector<8x8xf32> -> vector<8x32xf32>
    %119 = vector.extract_strided_slice %109 {offsets = [4, 0, 0], sizes = [1, 8, 8], strides = [1, 1, 1]} : vector<8x8x8xf32> to vector<1x8x8xf32>
    %120 = vector.shape_cast %119 : vector<1x8x8xf32> to vector<8x8xf32>
    %121 = vector.extract_strided_slice %109 {offsets = [5, 0, 0], sizes = [1, 8, 8], strides = [1, 1, 1]} : vector<8x8x8xf32> to vector<1x8x8xf32>
    %122 = vector.shape_cast %121 : vector<1x8x8xf32> to vector<8x8xf32>
    %123 = vector.extract_strided_slice %109 {offsets = [6, 0, 0], sizes = [1, 8, 8], strides = [1, 1, 1]} : vector<8x8x8xf32> to vector<1x8x8xf32>
    %124 = vector.shape_cast %123 : vector<1x8x8xf32> to vector<8x8xf32>
    %125 = vector.extract_strided_slice %109 {offsets = [7, 0, 0], sizes = [1, 8, 8], strides = [1, 1, 1]} : vector<8x8x8xf32> to vector<1x8x8xf32>
    %126 = vector.shape_cast %125 : vector<1x8x8xf32> to vector<8x8xf32>
    %127 = tpu.concatenate %120, %122, %124, %126 in 1 : vector<8x8xf32>, vector<8x8xf32>, vector<8x8xf32>, vector<8x8xf32> -> vector<8x32xf32>
    %128 = tpu.concatenate %118, %127 in 0 : vector<8x32xf32>, vector<8x32xf32> -> vector<16x32xf32>
    %129 = arith.truncf %128 : vector<16x32xf32> to vector<16x32xbf16>
    %c0_27 = arith.constant 0 : index
    %c0_28 = arith.constant 0 : index
    %c0_29 = arith.constant 0 : index
    %130 = vector.load %arg8[%c0_27, %c0_28, %c0_29] : memref<1x32x32xbf16, #tpu.memory_space<vmem>>, vector<1x32x32xbf16>
    %131 = vector.shape_cast %130 : vector<1x32x32xbf16> to vector<32x32xbf16>
    %cst_30 = arith.constant dense<0.000000e+00> : vector<16x32xf32>
    %132 = tpu.matmul %129, %131, %cst_30 {dimension_numbers = #tpu.dot_dimension_numbers<[1], [0], [0], [1], [0, 0, 1, 1], [], []>} : vector<16x32xbf16>, vector<32x32xbf16>, vector<16x32xf32> -> vector<16x32xf32>
    %c0_31 = arith.constant 0 : index
    %c0_32 = arith.constant 0 : index
    %c0_33 = arith.constant 0 : index
    %133 = vector.load %arg9[%c0_31, %c0_32, %c0_33] : memref<1x1x32xf32, #tpu.memory_space<vmem>>, vector<1x1x32xf32>
    %134 = vector.shape_cast %133 : vector<1x1x32xf32> to vector<1x32xf32>
    %135 = vector.broadcast %134 : vector<1x32xf32> to vector<16x32xf32>
    %136 = arith.addf %132, %135 : vector<16x32xf32>
    %137 = arith.addf %3, %136 : vector<16x32xf32>
    %c0_34 = arith.constant 0 : index
    %c0_35 = arith.constant 0 : index
    %c0_36 = arith.constant 0 : index
    %138 = vector.load %arg10[%c0_34, %c0_35, %c0_36] : memref<1x1x32xf32, #tpu.memory_space<vmem>>, vector<1x1x32xf32>
    %139 = vector.shape_cast %138 : vector<1x1x32xf32> to vector<1x32xf32>
    %c0_37 = arith.constant 0 : index
    %c0_38 = arith.constant 0 : index
    %c0_39 = arith.constant 0 : index
    %140 = vector.load %arg11[%c0_37, %c0_38, %c0_39] : memref<1x1x32xf32, #tpu.memory_space<vmem>>, vector<1x1x32xf32>
    %141 = vector.shape_cast %140 : vector<1x1x32xf32> to vector<1x32xf32>
    %cst_40 = arith.constant dense<0.000000e+00> : vector<16xf32>
    %142 = vector.multi_reduction <add>, %137, %cst_40 [1] : vector<16x32xf32> to vector<16xf32>
    %143 = vector.shape_cast %142 : vector<16xf32> to vector<16x1xf32>
    %cst_41 = arith.constant 3.200000e+01 : f32
    %144 = vector.broadcast %cst_41 : f32 to vector<16x1xf32>
    %145 = arith.divf %143, %144 : vector<16x1xf32>
    %146 = vector.broadcast %145 : vector<16x1xf32> to vector<16x32xf32>
    %147 = arith.subf %137, %146 : vector<16x32xf32>
    %148 = arith.mulf %147, %147 : vector<16x32xf32>
    %cst_42 = arith.constant dense<0.000000e+00> : vector<16xf32>
    %149 = vector.multi_reduction <add>, %148, %cst_42 [1] : vector<16x32xf32> to vector<16xf32>
    %150 = vector.shape_cast %149 : vector<16xf32> to vector<16x1xf32>
    %cst_43 = arith.constant 3.200000e+01 : f32
    %151 = vector.broadcast %cst_43 : f32 to vector<16x1xf32>
    %152 = arith.divf %150, %151 : vector<16x1xf32>
    %153 = vector.broadcast %145 : vector<16x1xf32> to vector<16x32xf32>
    %154 = arith.subf %137, %153 : vector<16x32xf32>
    %cst_44 = arith.constant 9.99999974E-6 : f32
    %155 = vector.broadcast %cst_44 : f32 to vector<16x1xf32>
    %156 = arith.addf %152, %155 : vector<16x1xf32>
    %157 = math.rsqrt %156 : vector<16x1xf32>
    %158 = vector.broadcast %157 : vector<16x1xf32> to vector<16x32xf32>
    %159 = arith.mulf %154, %158 : vector<16x32xf32>
    %160 = vector.broadcast %139 : vector<1x32xf32> to vector<16x32xf32>
    %161 = arith.mulf %159, %160 : vector<16x32xf32>
    %162 = vector.broadcast %141 : vector<1x32xf32> to vector<16x32xf32>
    %163 = arith.addf %161, %162 : vector<16x32xf32>
    %164 = arith.truncf %163 : vector<16x32xf32> to vector<16x32xbf16>
    %c0_45 = arith.constant 0 : index
    %c0_46 = arith.constant 0 : index
    %c0_47 = arith.constant 0 : index
    %165 = vector.load %arg12[%c0_45, %c0_46, %c0_47] : memref<1x32x128xbf16, #tpu.memory_space<vmem>>, vector<1x32x128xbf16>
    %166 = vector.shape_cast %165 : vector<1x32x128xbf16> to vector<32x128xbf16>
    %cst_48 = arith.constant dense<0.000000e+00> : vector<16x128xf32>
    %167 = tpu.matmul %164, %166, %cst_48 {dimension_numbers = #tpu.dot_dimension_numbers<[1], [0], [0], [1], [0, 0, 1, 1], [], []>} : vector<16x32xbf16>, vector<32x128xbf16>, vector<16x128xf32> -> vector<16x128xf32>
    %c0_49 = arith.constant 0 : index
    %c0_50 = arith.constant 0 : index
    %c0_51 = arith.constant 0 : index
    %168 = vector.load %arg13[%c0_49, %c0_50, %c0_51] : memref<1x1x128xf32, #tpu.memory_space<vmem>>, vector<1x1x128xf32>
    %169 = vector.shape_cast %168 : vector<1x1x128xf32> to vector<1x128xf32>
    %170 = vector.broadcast %169 : vector<1x128xf32> to vector<16x128xf32>
    %171 = arith.addf %167, %170 : vector<16x128xf32>
    %172 = arith.negf %171 : vector<16x128xf32>
    %173 = math.exp %172 : vector<16x128xf32>
    %cst_52 = arith.constant 1.000000e+00 : f32
    %174 = vector.broadcast %cst_52 : f32 to vector<16x128xf32>
    %175 = arith.addf %174, %173 : vector<16x128xf32>
    %176 = arith.divf %174, %175 : vector<16x128xf32>
    %177 = arith.mulf %171, %176 : vector<16x128xf32>
    %178 = arith.truncf %177 : vector<16x128xf32> to vector<16x128xbf16>
    %c0_53 = arith.constant 0 : index
    %c0_54 = arith.constant 0 : index
    %c0_55 = arith.constant 0 : index
    %179 = vector.load %arg14[%c0_53, %c0_54, %c0_55] : memref<1x128x32xbf16, #tpu.memory_space<vmem>>, vector<1x128x32xbf16>
    %180 = vector.shape_cast %179 : vector<1x128x32xbf16> to vector<128x32xbf16>
    %cst_56 = arith.constant dense<0.000000e+00> : vector<16x32xf32>
    %181 = tpu.matmul %178, %180, %cst_56 {dimension_numbers = #tpu.dot_dimension_numbers<[1], [0], [0], [1], [0, 0, 1, 1], [], []>} : vector<16x128xbf16>, vector<128x32xbf16>, vector<16x32xf32> -> vector<16x32xf32>
    %c0_57 = arith.constant 0 : index
    %c0_58 = arith.constant 0 : index
    %c0_59 = arith.constant 0 : index
    %182 = vector.load %arg15[%c0_57, %c0_58, %c0_59] : memref<1x1x32xf32, #tpu.memory_space<vmem>>, vector<1x1x32xf32>
    %183 = vector.shape_cast %182 : vector<1x1x32xf32> to vector<1x32xf32>
    %184 = vector.broadcast %183 : vector<1x32xf32> to vector<16x32xf32>
    %185 = arith.addf %181, %184 : vector<16x32xf32>
    %186 = arith.addf %137, %185 : vector<16x32xf32>
    %c0_60 = arith.constant 0 : index
    %c0_61 = arith.constant 0 : index
    %187 = vector.load %arg25[%c0_60, %c0_61] : memref<16x32xf32, #tpu.memory_space<vmem>>, vector<16x32xf32>
    tpu.vector_store %arg25[%c0_60, %c0_61], %186 {strides = array<i32>} : memref<16x32xf32, #tpu.memory_space<vmem>>, vector<16x32xf32>,
    %c1_i32 = arith.constant 1 : i32
    %188 = arith.cmpi eq, %arg0, %c1_i32 : i32
    %189 = arith.extui %188 : i1 to i32
    %c0_i32_62 = arith.constant 0 : i32
    %190 = arith.cmpi ne, %189, %c0_i32_62 : i32
    scf.if %190 {
      %c0_63 = arith.constant 0 : index
      %c0_64 = arith.constant 0 : index
      %191 = vector.load %arg3[%c0_63, %c0_64] : memref<16x1xf32, #tpu.memory_space<vmem>>, vector<16x1xf32>
      %192 = vector.broadcast %191 : vector<16x1xf32> to vector<16x32xf32>
      %193 = arith.mulf %186, %192 : vector<16x32xf32>
      %c0_65 = arith.constant 0 : index
      %c0_66 = arith.constant 0 : index
      %194 = vector.load %arg16[%c0_65, %c0_66] : memref<1x32xf32, #tpu.memory_space<vmem>>, vector<1x32xf32>
      %c0_67 = arith.constant 0 : index
      %c0_68 = arith.constant 0 : index
      %195 = vector.load %arg17[%c0_67, %c0_68] : memref<1x32xf32, #tpu.memory_space<vmem>>, vector<1x32xf32>
      %cst_69 = arith.constant dense<0.000000e+00> : vector<16xf32>
      %196 = vector.multi_reduction <add>, %193, %cst_69 [1] : vector<16x32xf32> to vector<16xf32>
      %197 = vector.shape_cast %196 : vector<16xf32> to vector<16x1xf32>
      %cst_70 = arith.constant 3.200000e+01 : f32
      %198 = vector.broadcast %cst_70 : f32 to vector<16x1xf32>
      %199 = arith.divf %197, %198 : vector<16x1xf32>
      %200 = vector.broadcast %199 : vector<16x1xf32> to vector<16x32xf32>
      %201 = arith.subf %193, %200 : vector<16x32xf32>
      %202 = arith.mulf %201, %201 : vector<16x32xf32>
      %cst_71 = arith.constant dense<0.000000e+00> : vector<16xf32>
      %203 = vector.multi_reduction <add>, %202, %cst_71 [1] : vector<16x32xf32> to vector<16xf32>
      %204 = vector.shape_cast %203 : vector<16xf32> to vector<16x1xf32>
      %cst_72 = arith.constant 3.200000e+01 : f32
      %205 = vector.broadcast %cst_72 : f32 to vector<16x1xf32>
      %206 = arith.divf %204, %205 : vector<16x1xf32>
      %207 = vector.broadcast %199 : vector<16x1xf32> to vector<16x32xf32>
      %208 = arith.subf %193, %207 : vector<16x32xf32>
      %cst_73 = arith.constant 9.99999974E-6 : f32
      %209 = vector.broadcast %cst_73 : f32 to vector<16x1xf32>
      %210 = arith.addf %206, %209 : vector<16x1xf32>
      %211 = math.rsqrt %210 : vector<16x1xf32>
      %212 = vector.broadcast %211 : vector<16x1xf32> to vector<16x32xf32>
      %213 = arith.mulf %208, %212 : vector<16x32xf32>
      %214 = vector.broadcast %194 : vector<1x32xf32> to vector<16x32xf32>
      %215 = arith.mulf %213, %214 : vector<16x32xf32>
      %216 = vector.broadcast %195 : vector<1x32xf32> to vector<16x32xf32>
      %217 = arith.addf %215, %216 : vector<16x32xf32>
      %218 = arith.truncf %217 : vector<16x32xf32> to vector<16x32xbf16>
      %c0_74 = arith.constant 0 : index
      %c0_75 = arith.constant 0 : index
      %219 = vector.load %arg18[%c0_74, %c0_75] : memref<32x128xbf16, #tpu.memory_space<vmem>>, vector<32x128xbf16>
      %cst_76 = arith.constant dense<0.000000e+00> : vector<16x128xf32>
      %220 = tpu.matmul %218, %219, %cst_76 {dimension_numbers = #tpu.dot_dimension_numbers<[1], [0], [0], [1], [0, 0, 1, 1], [], []>} : vector<16x32xbf16>, vector<32x128xbf16>, vector<16x128xf32> -> vector<16x128xf32>
      %c0_77 = arith.constant 0 : index
      %c0_78 = arith.constant 0 : index
      %221 = vector.load %arg23[%c0_77, %c0_78] : memref<16x128xf32, #tpu.memory_space<vmem>>, vector<16x128xf32>
      tpu.vector_store %arg23[%c0_77, %c0_78], %220 {strides = array<i32>} : memref<16x128xf32, #tpu.memory_space<vmem>>, vector<16x128xf32>,
      %222 = arith.truncf %193 : vector<16x32xf32> to vector<16x32xbf16>
      %c0_79 = arith.constant 0 : index
      %c0_80 = arith.constant 0 : index
      %223 = vector.load %arg19[%c0_79, %c0_80] : memref<32x32xbf16, #tpu.memory_space<vmem>>, vector<32x32xbf16>
      %cst_81 = arith.constant dense<0.000000e+00> : vector<16x32xf32>
      %224 = tpu.matmul %222, %223, %cst_81 {dimension_numbers = #tpu.dot_dimension_numbers<[1], [0], [0], [1], [0, 0, 1, 1], [], []>} : vector<16x32xbf16>, vector<32x32xbf16>, vector<16x32xf32> -> vector<16x32xf32>
      %c0_82 = arith.constant 0 : index
      %c0_83 = arith.constant 0 : index
      %225 = vector.load %arg20[%c0_82, %c0_83] : memref<1x32xf32, #tpu.memory_space<vmem>>, vector<1x32xf32>
      %226 = vector.broadcast %225 : vector<1x32xf32> to vector<16x32xf32>
      %227 = arith.addf %224, %226 : vector<16x32xf32>
      %228 = arith.negf %227 : vector<16x32xf32>
      %229 = math.exp %228 : vector<16x32xf32>
      %cst_84 = arith.constant 1.000000e+00 : f32
      %230 = vector.broadcast %cst_84 : f32 to vector<16x32xf32>
      %231 = arith.addf %230, %229 : vector<16x32xf32>
      %232 = arith.divf %230, %231 : vector<16x32xf32>
      %233 = arith.mulf %227, %232 : vector<16x32xf32>
      %234 = arith.truncf %233 : vector<16x32xf32> to vector<16x32xbf16>
      %c0_85 = arith.constant 0 : index
      %c0_86 = arith.constant 0 : index
      %235 = vector.load %arg21[%c0_85, %c0_86] : memref<32x128xbf16, #tpu.memory_space<vmem>>, vector<32x128xbf16>
      %cst_87 = arith.constant dense<0.000000e+00> : vector<16x128xf32>
      %236 = tpu.matmul %234, %235, %cst_87 {dimension_numbers = #tpu.dot_dimension_numbers<[1], [0], [0], [1], [0, 0, 1, 1], [], []>} : vector<16x32xbf16>, vector<32x128xbf16>, vector<16x128xf32> -> vector<16x128xf32>
      %c0_88 = arith.constant 0 : index
      %c0_89 = arith.constant 0 : index
      %237 = vector.load %arg22[%c0_88, %c0_89] : memref<1x128xf32, #tpu.memory_space<vmem>>, vector<1x128xf32>
      %238 = vector.broadcast %237 : vector<1x128xf32> to vector<16x128xf32>
      %239 = arith.addf %236, %238 : vector<16x128xf32>
      %c0_90 = arith.constant 0 : index
      %c0_91 = arith.constant 0 : index
      %240 = vector.load %arg24[%c0_90, %c0_91] : memref<16x128xf32, #tpu.memory_space<vmem>>, vector<16x128xf32>
      tpu.vector_store %arg24[%c0_90, %c0_91], %239 {strides = array<i32>} : memref<16x128xf32, #tpu.memory_space<vmem>>, vector<16x128xf32>,
    } else {
    }
    return
  }
  func.func @transform_0(%arg0: i32) -> (i32, i32) {
    %c0_i32 = arith.constant 0 : i32
    %c0_i32_0 = arith.constant 0 : i32
    %c0_i32_1 = arith.constant 0 : i32
    return %c0_i32, %c0_i32_0 : i32, i32
  }
  func.func @transform_1(%arg0: i32) -> (i32, i32, i32) {
    %c0_i32 = arith.constant 0 : i32
    %c0_i32_0 = arith.constant 0 : i32
    %c0_i32_1 = arith.constant 0 : i32
    %c0_i32_2 = arith.constant 0 : i32
    return %c0_i32, %c0_i32_0, %c0_i32_1 : i32, i32, i32
  }
  func.func @transform_2(%arg0: i32) -> (i32, i32) {
    %c0_i32 = arith.constant 0 : i32
    %c0_i32_0 = arith.constant 0 : i32
    %c0_i32_1 = arith.constant 0 : i32
    return %c0_i32, %c0_i32_0 : i32, i32
  }
  func.func @transform_3(%arg0: i32) -> (i32, i32, i32) {
    %c0_i32 = arith.constant 0 : i32
    %c0_i32_0 = arith.constant 0 : i32
    %c0_i32_1 = arith.constant 0 : i32
    return %arg0, %c0_i32, %c0_i32_0 : i32, i32, i32
  }
  func.func @transform_4(%arg0: i32) -> (i32, i32, i32) {
    %c0_i32 = arith.constant 0 : i32
    %c0_i32_0 = arith.constant 0 : i32
    %c0_i32_1 = arith.constant 0 : i32
    return %arg0, %c0_i32, %c0_i32_0 : i32, i32, i32
  }
  func.func @transform_5(%arg0: i32) -> (i32, i32, i32) {
    %c0_i32 = arith.constant 0 : i32
    %c0_i32_0 = arith.constant 0 : i32
    %c0_i32_1 = arith.constant 0 : i32
    return %arg0, %c0_i32, %c0_i32_0 : i32, i32, i32
  }
  func.func @transform_6(%arg0: i32) -> (i32, i32, i32) {
    %c0_i32 = arith.constant 0 : i32
    %c0_i32_0 = arith.constant 0 : i32
    %c0_i32_1 = arith.constant 0 : i32
    return %arg0, %c0_i32, %c0_i32_0 : i32, i32, i32
  }
  func.func @transform_7(%arg0: i32) -> (i32, i32, i32) {
    %c0_i32 = arith.constant 0 : i32
    %c0_i32_0 = arith.constant 0 : i32
    %c0_i32_1 = arith.constant 0 : i32
    return %arg0, %c0_i32, %c0_i32_0 : i32, i32, i32
  }
  func.func @transform_8(%arg0: i32) -> (i32, i32, i32) {
    %c0_i32 = arith.constant 0 : i32
    %c0_i32_0 = arith.constant 0 : i32
    %c0_i32_1 = arith.constant 0 : i32
    return %arg0, %c0_i32, %c0_i32_0 : i32, i32, i32
  }
  func.func @transform_9(%arg0: i32) -> (i32, i32, i32) {
    %c0_i32 = arith.constant 0 : i32
    %c0_i32_0 = arith.constant 0 : i32
    %c0_i32_1 = arith.constant 0 : i32
    return %arg0, %c0_i32, %c0_i32_0 : i32, i32, i32
  }
  func.func @transform_10(%arg0: i32) -> (i32, i32, i32) {
    %c0_i32 = arith.constant 0 : i32
    %c0_i32_0 = arith.constant 0 : i32
    %c0_i32_1 = arith.constant 0 : i32
    return %arg0, %c0_i32, %c0_i32_0 : i32, i32, i32
  }
  func.func @transform_11(%arg0: i32) -> (i32, i32, i32) {
    %c0_i32 = arith.constant 0 : i32
    %c0_i32_0 = arith.constant 0 : i32
    %c0_i32_1 = arith.constant 0 : i32
    return %arg0, %c0_i32, %c0_i32_0 : i32, i32, i32
  }
  func.func @transform_12(%arg0: i32) -> (i32, i32, i32) {
    %c0_i32 = arith.constant 0 : i32
    %c0_i32_0 = arith.constant 0 : i32
    %c0_i32_1 = arith.constant 0 : i32
    return %arg0, %c0_i32, %c0_i32_0 : i32, i32, i32
  }
  func.func @transform_13(%arg0: i32) -> (i32, i32, i32) {
    %c0_i32 = arith.constant 0 : i32
    %c0_i32_0 = arith.constant 0 : i32
    %c0_i32_1 = arith.constant 0 : i32
    return %arg0, %c0_i32, %c0_i32_0 : i32, i32, i32
  }
  func.func @transform_14(%arg0: i32) -> (i32, i32, i32) {
    %c0_i32 = arith.constant 0 : i32
    %c0_i32_0 = arith.constant 0 : i32
    %c0_i32_1 = arith.constant 0 : i32
    return %arg0, %c0_i32, %c0_i32_0 : i32, i32, i32
  }
  func.func @transform_15(%arg0: i32) -> (i32, i32) {
    %c0_i32 = arith.constant 0 : i32
    %c0_i32_0 = arith.constant 0 : i32
    %c0_i32_1 = arith.constant 0 : i32
    return %c0_i32, %c0_i32_0 : i32, i32
  }
  func.func @transform_16(%arg0: i32) -> (i32, i32) {
    %c0_i32 = arith.constant 0 : i32
    %c0_i32_0 = arith.constant 0 : i32
    %c0_i32_1 = arith.constant 0 : i32
    return %c0_i32, %c0_i32_0 : i32, i32
  }
  func.func @transform_17(%arg0: i32) -> (i32, i32) {
    %c0_i32 = arith.constant 0 : i32
    %c0_i32_0 = arith.constant 0 : i32
    %c0_i32_1 = arith.constant 0 : i32
    return %c0_i32, %c0_i32_0 : i32, i32
  }
  func.func @transform_18(%arg0: i32) -> (i32, i32) {
    %c0_i32 = arith.constant 0 : i32
    %c0_i32_0 = arith.constant 0 : i32
    %c0_i32_1 = arith.constant 0 : i32
    return %c0_i32, %c0_i32_0 : i32, i32
  }
  func.func @transform_19(%arg0: i32) -> (i32, i32) {
    %c0_i32 = arith.constant 0 : i32
    %c0_i32_0 = arith.constant 0 : i32
    %c0_i32_1 = arith.constant 0 : i32
    return %c0_i32, %c0_i32_0 : i32, i32
  }
  func.func @transform_20(%arg0: i32) -> (i32, i32) {
    %c0_i32 = arith.constant 0 : i32
    %c0_i32_0 = arith.constant 0 : i32
    %c0_i32_1 = arith.constant 0 : i32
    return %c0_i32, %c0_i32_0 : i32, i32
  }
  func.func @transform_21(%arg0: i32) -> (i32, i32) {
    %c0_i32 = arith.constant 0 : i32
    %c0_i32_0 = arith.constant 0 : i32
    %c0_i32_1 = arith.constant 0 : i32
    return %c0_i32, %c0_i32_0 : i32, i32
  }
  func.func @transform_22(%arg0: i32) -> (i32, i32) {
    %c0_i32 = arith.constant 0 : i32
    %c0_i32_0 = arith.constant 0 : i32
    %c0_i32_1 = arith.constant 0 : i32
    return %c0_i32, %c0_i32_0 : i32, i32
  }
  func.func @transform_23(%arg0: i32) -> (i32, i32) {
    %c0_i32 = arith.constant 0 : i32
    %c0_i32_0 = arith.constant 0 : i32
    %c0_i32_1 = arith.constant 0 : i32
    return %c0_i32, %c0_i32_0 : i32, i32
  }
}

</mosaic_0001>

<bundles_post_ra>
// kernel: tpu_custom_call.1
= control target key start
LH: loop header
LB: loop body
LE: loop exit
PB: predicated region body
PF: predicated region fallthrough
CT: control target
= control target key end

     0   :  { %s3939_s0 = inlined_call_operand.vmem [shape: bf16[16,32], index: 0, kind: input, shape index: {}]   ;;  %s3940_s1 = inlined_call_operand.vmem [shape: f32[8,1,8], index: 1, kind: input, shape index: {}]   ;;  %s3941_s2 = inlined_call_operand.vmem [shape: f32[16,1], index: 2, kind: input, shape index: {}]   ;;  %s3942_s3 = inlined_call_operand.vmem [shape: f32[2,1,32], index: 3, kind: input, shape index: {}]   ;;  %s3943_s4 = inlined_call_operand.vmem [shape: f32[2,1,32], index: 4, kind: input, shape index: {}]   ;;  %s3944_s5 = inlined_call_operand.vmem [shape: bf16[2,32,96], index: 5, kind: input, shape index: {}]   ;;  %s3945_s6 = inlined_call_operand.vmem [shape: f32[2,1,96], index: 6, kind: input, shape index: {}]   ;;  %s3946_s7 = inlined_call_operand.vmem [shape: bf16[2,32,32], index: 7, kind: input, shape index: {}]   ;;  %s3947_s8 = inlined_call_operand.vmem [shape: f32[2,1,32], index: 8, kind: input, shape index: {}]   ;;  %s3948_s9 = inlined_call_operand.vmem [shape: f32[2,1,32], index: 9, kind: input, shape index: {}]   ;;  %s3949_s10 = inlined_call_operand.vmem [shape: f32[2,1,32], index: 10, kind: input, shape index: {}]   ;;  %s3950_s11 = inlined_call_operand.vmem [shape: bf16[2,32,128], index: 11, kind: input, shape index: {}]   ;;  %s3951_s12 = inlined_call_operand.vmem [shape: f32[2,1,128], index: 12, kind: input, shape index: {}]   ;;  %s3952_s13 = inlined_call_operand.vmem [shape: bf16[2,128,32], index: 13, kind: input, shape index: {}]   ;;  %s3953_s14 = inlined_call_operand.vmem [shape: f32[2,1,32], index: 14, kind: input, shape index: {}]   ;;  %s3954_s15 = inlined_call_operand.vmem [shape: f32[1,32], index: 15, kind: input, shape index: {}]   ;;  %s3955_s16 = inlined_call_operand.vmem [shape: f32[1,32], index: 16, kind: input, shape index: {}]   ;;  %s3956_s17 = inlined_call_operand.vmem [shape: bf16[32,128], index: 17, kind: input, shape index: {}]   ;;  %s3957_s18 = inlined_call_operand.vmem [shape: bf16[32,32], index: 18, kind: input, shape index: {}]   ;;  %s3958_s19 = inlined_call_operand.vmem [shape: f32[1,32], index: 19, kind: input, shape index: {}]   ;;  %s3959_s20 = inlined_call_operand.vmem [shape: bf16[32,128], index: 20, kind: input, shape index: {}]   ;;  %s3960_s21 = inlined_call_operand.vmem [shape: f32[1,128], index: 21, kind: input, shape index: {}]   ;;  %s3961_s22 = inlined_call_operand.hbm [shape: f32[16,128], index: 22, kind: output, shape index: {0}]   ;;  %s3962_s23 = inlined_call_operand.hbm [shape: f32[16,128], index: 23, kind: output, shape index: {1}]  }
   0x1   :  { %3969 = sst [smem:[#allocation10_spill]] %s3939_s0 }
   0x2   :  { %3970 = sst [smem:[#allocation11_spill]] %s3940_s1 }
   0x3   :  { %3971 = sst [smem:[#allocation12_spill]] %s3941_s2 }
   0x4   :  { %3972 = sst [smem:[#allocation13_spill]] %s3942_s3 }
   0x5   :  { %3973 = sst [smem:[#allocation14_spill]] %s3943_s4 }
   0x6   :  { %3974 = sst [smem:[#allocation15_spill]] %s3944_s5 }
   0x7   :  { %3975 = sst [smem:[#allocation16_spill]] %s3945_s6 }
   0x8   :  { %3976 = sst [smem:[#allocation17_spill]] %s3946_s7 }
   0x9   :  { %3977 = sst [smem:[#allocation18_spill]] %s3954_s15 }
   0xa   :  { %3978 = sst [smem:[#allocation19_spill]] %s3955_s16 }
   0xb   :  { %3979 = sst [smem:[#allocation20_spill]] %s3959_s20 }
   0xc   :  { %3980 = sst [smem:[#allocation21_spill]] %s3960_s21 }
   0xd   :  { %3981 = sst [smem:[#allocation22_spill]] %s3961_s22 }
   0xe   :  { %3982 = sst [smem:[#allocation23_spill]] %s3962_s23 }
   0xf   :  { %29 = vsyncpa [#allocation4], 0 }
  0x10   :  { %30 = vsyncpa [#allocation6], 0  ;;  %s3425_s4 = smov 0  }
  0x11 LB: > { %3983 = sst [smem:[#allocation9_spill]] %s3287_s4  ;;  %s3431_s30 = sadd.s32 4294967295, %s3287_s4   ;;  %s3287_s4 = sphi %s3425_s4, %s36_s4  }
  0x12   : > { %p2775_p0 = scmp.ge.s32.totalorder %s3287_s4, 1  ;;  %p726_p1 = scmp.lt.s32.totalorder %s3287_s4, 3 }
  0x14   : > { %p727_p2 = pnand %p2775_p0, %p726_p1 }
  0x15   : > { %p824_p3 = scmp.lt.s32.totalorder (!%p727_p2), %s3431_s30, 1  ;;  %s3987_s23 = sld [smem:[#allocation15_spill]] (!%p727_p2) }
  0x16   : > { %730 = sbr.rel (%p727_p2) target bundleno = 3485 (0xd9d), region = 108  ;;  %s3988_s16 = sld [smem:[#allocation17_spill]] (!%p727_p2) }
  0x17   : > { %p2784_p4 = scmp.ne.s32.totalorder (!%p727_p2), %s3431_s30, 0 }
  0x1d   : > { %s3437_s24 = scalar_select %p824_p3, %s3431_s30, 1 }
  0x1e   : > { %872 = sbr.rel (%p2784_p4) target bundleno = 40 (0x28), region = 112  ;;  %s3989_s25 = sld [smem:[#allocation10_spill]] (!%p2784_p4)  ;;  %vm877_vm0 = vcmask (!%p2784_p4), 261120  }
  0x1f   : > { %s2858_s28 = sshll.u32 %s3437_s24, 4  ;;  %s848_s7 = scalar_lea.vmem %s3948_s9, %s3437_s24 }
  0x20   : > { %s3455_s22 = scalar_lea.vmem %s3987_s23, %s2858_s28  ;;  %s3460_s15 = scalar_lea.vmem %s3988_s16, %s2858_s28 }
  0x21   : > { %s851_s0 = scalar_lea.vmem %s3949_s10, %s3437_s24  ;;  %s3477_s5 = scalar_lea.vmem %s3950_s11, %s2858_s28 }
  0x22   : > { %s859_s21 = scalar_lea.vmem %s3951_s12, %s3437_s24  ;;  %s2861_s4 = sshll.u32 %s3437_s24, 6 }
  0x23   : > { %s3487_s2 = scalar_lea.vmem %s3952_s13, %s2861_s4  ;;  %s867_s29 = scalar_lea.vmem %s3953_s14, %s3437_s24 }
  0x24   : > { %v2863_v0 = vld [vmem:[%s3989_s25] sm:$0xff] (!%p2784_p4)  }
  0x25   : > { %v2864_v1 = vunpack.c.l.bf16 %v2863_v0  ;;  %v2865_v2 = vunpack.c.h.bf16 %v2863_v0 }
  0x27   : > { %878 = vst.msk [vmem:[#allocation2] sm:$0xff] %vm877_vm0, %v2864_v1  ;;  %879 = vst.msk [vmem:[#allocation2 + $0x8] sm:$0xff] %vm877_vm0, %v2865_v2 }
  0x28 PF: > { %vm884_vm1 = vcmask 261120   ;;  %v3140_v17 = vld [vmem:[%s3455_s22] sm:$0xff]   ;;  %v3289_v18 = vmov 0.0   ;;  %v3141_v19 = vld [vmem:[%s3455_s22 + $0x8] sm:$0xff]   ;;  %vm3290_vm2 = vmmov 0   ;;  %s3990_s23 = sld [smem:[#allocation13_spill]] }
  0x29   : > { %2925 = vmatprep.subr.bf16.mxu0 %v3289_v18  ;;  %2945 = vmatprep.subr.bf16.mxu1 %v3289_v18  ;;  %s3992_s1 = sld [smem:[#allocation14_spill]]  ;;  %s3994_s28 = sld [smem:[#allocation16_spill]]  ;;  %vm1099_vm3 = vcmask 64512   ;;  %vm1590_vm4 = vcmask 1043456   ;;  %vm1983_vm5 = vcmask 130048   ;;  %vm1985_vm6 = vcmask 195584  }
  0x2a   : > { %2926 = vmatpush3.bf16.msra.mxu0 %v3140_v17  ;;  %2929 = vmatprep.mubr.msk.bf16.mxu0 %vm3290_vm2, %v3289_v18  ;;  %s3291_s22 = smov 112   ;;  %s3292_s4 = smov 120  }
  0x2b   : > { %2927 = vmatprep.subr.bf16.mxu0 %v3289_v18  ;;  %2947 = vmatprep.mubr.msk.bf16.mxu1 %vm3290_vm2, %v3289_v18  ;;  %s3295_s27 = smov 64   ;;  %p2836_p5 = scmp.ne.s32.totalorder %s3431_s30, 1 }
  0x2c   : > { %vm3301_vm7 = vmmov (!%p2836_p5), 0   ;;  %s4000_s3 = sld [smem:[#allocation19_spill]] (!%p2836_p5) }
  0x2e   : > { %v3497_v3 = vld [vmem:[#allocation2] sm:$0xff]  ;;  %v3499_v4 = vld [vmem:[#allocation2 + $0x8] sm:$0xff]  ;;  %2928 = vmatpush3.bf16.msra.mxu0 %v3141_v19  ;;  %s3991_s20 = scalar_lea.vmem %s3990_s23, %s3437_s24  ;;  %s3293_s23 = smov 104  }
  0x2f   : > { %v885_v5 = vsel %vm884_vm1, %v3497_v3, 0.0  ;;  %v888_v6 = vsel %vm884_vm1, %v3499_v4, 0.0  ;;  %2933 = vmatprep.subr.bf16.mxu0 %v3289_v18  ;;  %v2785_v28 = vld [vmem:[%s3991_s20] ss:$0 sm:$0xff]  ;;  %s3993_s6 = scalar_lea.vmem %s3992_s1, %s3437_s24  ;;  %s3995_s25 = scalar_lea.vmem %s3994_s28, %s3437_s24 }
  0x30   : > { %886 = vadd.xlane.f32.xlu0 %v885_v5  ;;  %v2786_v32 = vld [vmem:[%s3993_s6] ss:$0 sm:$0xff]  ;;  %s3294_s20 = smov 96   ;;  %s3996_s1 = sld [smem:[#allocation11_spill]] }
  0x31   : > { %v2787_v37 = vld [vmem:[%s3995_s25] ss:$0 sm:$0xff]  ;;  %s3296_s25 = smov 16  }
  0x34   : > { %889 = vadd.xlane.f32.xlu0 %v888_v6 }
  0xbd   : > { %v887_v7 = vpop.xlane.xlu0 %886 }
  0xbe   : > { %v892_v8 = vmul.f32 0.03125, %v887_v7 }
  0xc0   : > { %v894_v9 = vsub.f32 %v3497_v3, %v892_v8 }
  0xc1   : > { %v890_v10 = vpop.xlane.xlu0 %889 }
  0xc2   : > { %v893_v11 = vmul.f32 0.03125, %v890_v10  ;;  %v896_v12 = vmul.f32 %v894_v9, %v894_v9 }
  0xc4   : > { %v895_v13 = vsub.f32 %v3499_v4, %v893_v11  ;;  %v898_v14 = vsel %vm884_vm1, %v896_v12, 0.0 }
  0xc5   : > { %899 = vadd.xlane.f32.xlu1 %v898_v14 }
  0xc6   : > { %v897_v15 = vmul.f32 %v895_v13, %v895_v13 }
  0xc8   : > { %v901_v16 = vsel %vm884_vm1, %v897_v15, 0.0 }
  0xc9   : > { %902 = vadd.xlane.f32.xlu1 %v901_v16 }
 0x152   : > { %v900_v20 = vpop.xlane.xlu1 %899 }
 0x153   : > { %v904_v21 = vmul.f32 0.03125, %v900_v20 }
 0x155   : > { %v906_v22 = vadd.f32 1e-05, %v904_v21 }
 0x156   : > { %v903_v23 = vpop.xlane.xlu1 %902 }
 0x157   : > { %3154 = vrsqrt.f32 %v906_v22  ;;  %v905_v24 = vmul.f32 0.03125, %v903_v23 }
 0x159   : > { %v907_v25 = vadd.f32 1e-05, %v905_v24 }
 0x15b   : > { %3156 = vrsqrt.f32 %v907_v25 }
 0x161   : > { %v3155_v26 = vpop.eup %3154 }
 0x162   : > { %v910_v27 = vmul.f32 %v3155_v26, %v894_v9 }
 0x164   : > { %v918_v31 = vmul.f32 %v2785_v28, %v910_v27 }
 0x165   : > { %v3157_v29 = vpop.eup %3156 }
 0x166   : > { %v911_v30 = vmul.f32 %v3157_v29, %v895_v13  ;;  %v926_v34 = vadd.f32 %v2786_v32, %v918_v31  ;;  %v2791_v29 = vld [vmem:[%s3996_s1] ss:$0 sm:$0xff] }
 0x168   : > { %v919_v33 = vmul.f32 %v2785_v28, %v911_v30 }
 0x16a   : > { %v927_v35 = vadd.f32 %v2786_v32, %v919_v33 }
 0x16c   : > { %v928_v36 = vpack.c.bf16 %v927_v35, %v926_v34 }
 0x16e   : > { %2930 = vmatmul.mubr.msk.bf16.vlgmr.msra.gmra.mrb[0].mxu0 %vm884_vm1, %v928_v36  ;;  %v2792_v36 = vld [vmem:[%s3996_s1 + $0x1] ss:$0 sm:$0xff] }
 0x16f   : > { %2935 = vmatprep.mubr.msk.bf16.mxu0 %vm3290_vm2, %v3289_v18 }
 0x241   : > { %v989_v38 = vpop.f32.mrb[0].mxu0 }
 0x242   : > { %v990_v39 = vadd.f32 %v2787_v37, %v989_v38  ;;  %v2931_v40 = vpop.f32.mrb[1].mxu0 }
 0x243   : > { %v992_v41 = vpop.f32.mrb[2].mxu0 }
 0x244   : > { %1000 = vrot.lane.b32.xlu1 %v990_v39, %s3291_s22  ;;  %997 = vrot.lane.b32.xlu0 %v990_v39, %s3292_s4  ;;  %v2932_v42 = vpop.f32.mrb[3].mxu0  ;;  %v993_v43 = vadd.f32 %v2787_v37, %v992_v41  ;;  %v3537_v44 = vpack.c.bf16 %v990_v39, %v990_v39  ;;  %v1016_v58 = vmul.f32 0.35355338, %v990_v39  ;;  %v2793_v37 = vld [vmem:[%s3996_s1 + $0x2] ss:$0 sm:$0xff] }
 0x246   : > { %v3548_v52 = vpack.c.bf16 %v993_v43, %v993_v43  ;;  %v1024_v61 = vpack.c.bf16 %v1016_v58, %v1016_v58  ;;  %v1020_v13 = vmul.f32 0.35355338, %v993_v43 }
 0x248   : > { %1003 = vrot.lane.b32.xlu1 %v990_v39, %s3293_s23  ;;  %1010 = vrot.lane.b32.xlu0 %v993_v43, %s3291_s22  ;;  %v1028_v17 = vpack.c.bf16 %v1020_v13, %v1020_v13  ;;  %s3297_s22 = smov 8  }
 0x24c   : > { %1097 = vrot.lane.b32.xlu0 %v3537_v44, %s3294_s20  ;;  %1007 = vrot.lane.b32.xlu1 %v993_v43, %s3292_s4  ;;  %s3298_s4 = smov 24  }
 0x250   : > { %1013 = vrot.lane.b32.xlu1 %v993_v43, %s3293_s23 }
 0x2b6   : > { %v1001_v45 = vpop.permute.xlu1 %1000  ;;  %v998_v46 = vpop.permute.xlu0 %997 }
 0x2b7   : > { %v3540_v47 = vpack.c.bf16 %v1001_v45, %v1001_v45  ;;  %v3542_v48 = vpack.c.bf16 %v998_v46, %v998_v46  ;;  %v1018_v2 = vmul.f32 0.35355338, %v1001_v45  ;;  %v1017_v5 = vmul.f32 0.35355338, %v998_v46 }
 0x2b9   : > { %1196 = vrot.lane.b32.xlu0 %v3540_v47, %s3294_s20  ;;  %1147 = vrot.lane.b32.xlu1 %v3542_v48, %s3294_s20  ;;  %v1026_v8 = vpack.c.bf16 %v1018_v2, %v1018_v2  ;;  %v1025_v9 = vpack.c.bf16 %v1017_v5, %v1017_v5 }
 0x2ba   : > { %v1004_v49 = vpop.permute.xlu1 %1003  ;;  %v1011_v50 = vpop.permute.xlu0 %1010 }
 0x2bb   : > { %v3546_v51 = vpack.c.bf16 %v1004_v49, %v1004_v49  ;;  %v3552_v55 = vpack.c.bf16 %v1011_v50, %v1011_v50  ;;  %v1019_v12 = vmul.f32 0.35355338, %v1004_v49  ;;  %v1022_v21 = vmul.f32 0.35355338, %v1011_v50 }
 0x2bd   : > { %1245 = vrot.lane.b32.xlu1 %v3546_v51, %s3294_s20  ;;  %1294 = vrot.lane.b32.xlu0 %v3548_v52, %s3294_s20  ;;  %v1027_v16 = vpack.c.bf16 %v1019_v12, %v1019_v12  ;;  %v1030_v24 = vpack.c.bf16 %v1022_v21, %v1022_v21 }
 0x2be   : > { %v1098_v53 = vpop.permute.xlu0 %1097  ;;  %v1008_v54 = vpop.permute.xlu1 %1007 }
 0x2bf   : > { %v1104_v56 = vsel %vm1099_vm3, %v1098_v53, 0  ;;  %v3555_v57 = vpack.c.bf16 %v1008_v54, %v1008_v54  ;;  %v1021_v22 = vmul.f32 0.35355338, %v1008_v54 }
 0x2c0   : > { %2934 = vmatpush3.bf16.xpose.msra.mxu0 %v1104_v56  ;;  %v2794_v56 = vld [vmem:[%s3996_s1 + $0x3] ss:$0 sm:$0xff] }
 0x2c1   : > { %1343 = vrot.lane.b32.xlu1 %v3555_v57, %s3294_s20  ;;  %1392 = vrot.lane.b32.xlu0 %v3552_v55, %s3294_s20  ;;  %v1029_v25 = vpack.c.bf16 %v1021_v22, %v1021_v22 }
 0x2c2   : > { %v1014_v59 = vpop.permute.xlu1 %1013  ;;  %2939 = vmatprep.subr.bf16.mxu0 %v3289_v18 }
 0x2c3   : > { %v3560_v60 = vpack.c.bf16 %v1014_v59, %v1014_v59  ;;  %v1023_v27 = vmul.f32 0.35355338, %v1014_v59  ;;  %v2795_v59 = vld [vmem:[%s3996_s1 + $0x4] ss:$0 sm:$0xff] }
 0x2c5   : > { %1441 = vrot.lane.b32.xlu1 %v3560_v60, %s3294_s20  ;;  %v1031_v28 = vpack.c.bf16 %v1023_v27, %v1023_v27  ;;  %s3997_s20 = scalar_lea.vmem %s3947_s8, %s3437_s24 }
 0x2c7   : > { %2936 = vmatmul.mubr.msk.bf16.vlgmr.msra.gmra.mrb[4].mxu0 %vm1099_vm3, %v1024_v61 }
 0x2c8   : > { %2941 = vmatprep.mubr.msk.bf16.mxu0 %vm3290_vm2, %v3289_v18 }
 0x32b   : > { %v1197_v62 = vpop.permute.xlu0 %1196  ;;  %v1148_v63 = vpop.permute.xlu1 %1147 }
 0x32c   : > { %v1153_v0 = vsel %vm1099_vm3, %v1148_v63, 0  ;;  %v1202_v1 = vsel %vm1099_vm3, %v1197_v62, 0 }
 0x32d   : > { %2940 = vmatpush3.bf16.xpose.msra.mxu0 %v1153_v0  ;;  %2946 = vmatpush3.bf16.xpose.msra.mxu1 %v1202_v1 }
 0x32e   : > { %2951 = vmatprep.subr.bf16.mxu0 %v3289_v18  ;;  %2957 = vmatprep.subr.bf16.mxu1 %v3289_v18 }
 0x32f   : > { %v1246_v6 = vpop.permute.xlu1 %1245  ;;  %v1295_v7 = vpop.permute.xlu0 %1294 }
 0x330   : > { %v1251_v10 = vsel %vm1099_vm3, %v1246_v6, 0  ;;  %v1300_v11 = vsel %vm1099_vm3, %v1295_v7, 0 }
 0x333   : > { %v1344_v14 = vpop.permute.xlu1 %1343  ;;  %v1393_v15 = vpop.permute.xlu0 %1392 }
 0x334   : > { %2942 = vmatmul.mubr.msk.bf16.vlgmr.msra.gmra.mrb[8].mxu0 %vm1099_vm3, %v1025_v9  ;;  %2948 = vmatmul.mubr.msk.bf16.vlgmr.msra.gmra.mrb[0].mxu1 %vm1099_vm3, %v1026_v8  ;;  %v1349_v19 = vsel %vm1099_vm3, %v1344_v14, 0  ;;  %v1398_v20 = vsel %vm1099_vm3, %v1393_v15, 0  ;;  %v2797_v9 = vld [vmem:[%s3996_s1 + $0x6] ss:$0 sm:$0xff] }
 0x335   : > { %2952 = vmatpush3.bf16.xpose.msra.mxu0 %v1251_v10  ;;  %2958 = vmatpush3.bf16.xpose.msra.mxu1 %v1300_v11  ;;  %v2796_v10 = vld [vmem:[%s3996_s1 + $0x5] ss:$0 sm:$0xff] }
 0x336   : > { %2953 = vmatprep.mubr.msk.bf16.mxu0 %vm3290_vm2, %v3289_v18  ;;  %2959 = vmatprep.mubr.msk.bf16.mxu1 %vm3290_vm2, %v3289_v18 }
 0x337   : > { %2963 = vmatprep.subr.bf16.mxu0 %v3289_v18  ;;  %2969 = vmatprep.subr.bf16.mxu1 %v3289_v18  ;;  %v1442_v23 = vpop.permute.xlu1 %1441 }
 0x338   : > { %v1447_v26 = vsel %vm1099_vm3, %v1442_v23, 0 }
 0x33c   : > { %2954 = vmatmul.mubr.msk.bf16.vlgmr.msra.gmra.mrb[12].mxu0 %vm1099_vm3, %v1027_v16  ;;  %2960 = vmatmul.mubr.msk.bf16.vlgmr.msra.gmra.mrb[4].mxu1 %vm1099_vm3, %v1028_v17 }
 0x33d   : > { %2964 = vmatpush3.bf16.xpose.msra.mxu0 %v1349_v19  ;;  %2970 = vmatpush3.bf16.xpose.msra.mxu1 %v1398_v20 }
 0x33e   : > { %2965 = vmatprep.mubr.msk.bf16.mxu0 %vm3290_vm2, %v3289_v18  ;;  %2971 = vmatprep.mubr.msk.bf16.mxu1 %vm3290_vm2, %v3289_v18 }
 0x33f   : > { %2975 = vmatprep.subr.bf16.mxu0 %v3289_v18  ;;  %2981 = vmatprep.subr.bf16.mxu1 %v3289_v18 }
 0x344   : > { %2966 = vmatmul.mubr.msk.bf16.vlgmr.msra.gmra.mrb[16].mxu0 %vm1099_vm3, %v1029_v25  ;;  %2972 = vmatmul.mubr.msk.bf16.vlgmr.msra.gmra.mrb[8].mxu1 %vm1099_vm3, %v1030_v24 }
 0x345   : > { %2976 = vmatpush3.bf16.xpose.msra.mxu0 %v1447_v26  ;;  %2977 = vmatprep.mubr.msk.bf16.mxu0 %vm3290_vm2, %v3289_v18 }
 0x346   : > { %2987 = vmatprep.subr.bf16.mxu0 %v3289_v18  ;;  %2983 = vmatprep.mubr.msk.bf16.mxu1 %vm3290_vm2, %v3289_v18 }
 0x34c   : > { %2978 = vmatmul.mubr.msk.bf16.vlgmr.msra.gmra.mrb[20].mxu0 %vm1099_vm3, %v1031_v28 }
 0x34d   : > { %2989 = vmatprep.mubr.msk.bf16.mxu0 %vm3290_vm2, %v3289_v18 }
 0x39a   : > { %v1140_v30 = vpop.f32.mrb[4].mxu0 }
 0x39b   : > { %v3604_v31 = vadd.f32 %v2791_v29, %v1140_v30  ;;  %v2937_v32 = vpop.f32.mrb[5].mxu0 }
 0x39c   : > { %v1143_v33 = vpop.f32.mrb[6].mxu0 }
 0x39d   : > { %v2938_v34 = vpop.f32.mrb[7].mxu0  ;;  %v1489_v35 = vsel %vm1099_vm3, %v3604_v31, -inf }
 0x39e   : > { %1490 = vmax.xlane.f32.xlu0 %v1489_v35  ;;  %v2798_v34 = vld [vmem:[%s3996_s1 + $0x7] ss:$0 sm:$0xff] }
 0x407   : > { %v1189_v38 = vpop.f32.mrb[8].mxu0  ;;  %v1238_v39 = vpop.f32.mrb[0].mxu1 }
 0x408   : > { %v3614_v40 = vadd.f32 %v2792_v36, %v1189_v38  ;;  %v3616_v41 = vadd.f32 %v2793_v37, %v1238_v39  ;;  %v2943_v42 = vpop.f32.mrb[9].mxu0  ;;  %v2949_v43 = vpop.f32.mrb[1].mxu1 }
 0x409   : > { %v1192_v45 = vpop.f32.mrb[10].mxu0  ;;  %v1241_v46 = vpop.f32.mrb[2].mxu1 }
 0x40a   : > { %v2944_v49 = vpop.f32.mrb[11].mxu0  ;;  %v2950_v50 = vpop.f32.mrb[3].mxu1  ;;  %v1495_v53 = vsel %vm1099_vm3, %v3616_v41, -inf  ;;  %v1492_v54 = vsel %vm1099_vm3, %v3614_v40, -inf }
 0x40b   : > { %1496 = vmax.xlane.f32.xlu0 %v1495_v53  ;;  %1493 = vmax.xlane.f32.xlu1 %v1492_v54 }
 0x40f   : > { %v1287_v58 = vpop.f32.mrb[12].mxu0  ;;  %v1336_v61 = vpop.f32.mrb[4].mxu1 }
 0x410   : > { %v3628_v62 = vadd.f32 %v2794_v56, %v1287_v58  ;;  %v2955_v63 = vpop.f32.mrb[13].mxu0  ;;  %v2961_v0 = vpop.f32.mrb[5].mxu1  ;;  %v3630_v5 = vadd.f32 %v2795_v59, %v1336_v61 }
 0x411   : > { %v1290_v1 = vpop.f32.mrb[14].mxu0  ;;  %v1339_v2 = vpop.f32.mrb[6].mxu1 }
 0x412   : > { %v2956_v6 = vpop.f32.mrb[15].mxu0  ;;  %v2962_v7 = vpop.f32.mrb[7].mxu1  ;;  %v1498_v8 = vsel %vm1099_vm3, %v3628_v62, -inf  ;;  %v1501_v11 = vsel %vm1099_vm3, %v3630_v5, -inf }
 0x413   : > { %1499 = vmax.xlane.f32.xlu0 %v1498_v8 }
 0x417   : > { %v1434_v12 = vpop.f32.mrb[8].mxu1  ;;  %1502 = vmax.xlane.f32.xlu0 %v1501_v11  ;;  %v1385_v13 = vpop.f32.mrb[16].mxu0 }
 0x418   : > { %v3642_v14 = vadd.f32 %v2797_v9, %v1434_v12  ;;  %v3644_v15 = vadd.f32 %v2796_v10, %v1385_v13  ;;  %v2967_v16 = vpop.f32.mrb[17].mxu0  ;;  %v2973_v17 = vpop.f32.mrb[9].mxu1 }
 0x419   : > { %v1388_v19 = vpop.f32.mrb[18].mxu0  ;;  %v1437_v20 = vpop.f32.mrb[10].mxu1 }
 0x41a   : > { %v2968_v21 = vpop.f32.mrb[19].mxu0  ;;  %v2974_v22 = vpop.f32.mrb[11].mxu1  ;;  %v1507_v23 = vsel %vm1099_vm3, %v3642_v14, -inf  ;;  %v1504_v24 = vsel %vm1099_vm3, %v3644_v15, -inf }
 0x41b   : > { %1508 = vmax.xlane.f32.xlu0 %v1507_v23  ;;  %1505 = vmax.xlane.f32.xlu1 %v1504_v24 }
 0x41f   : > { %v1483_v25 = vpop.f32.mrb[20].mxu0 }
 0x420   : > { %v2979_v26 = vpop.f32.mrb[21].mxu0  ;;  %v3662_v35 = vadd.f32 %v2798_v34, %v1483_v25 }
 0x421   : > { %v1486_v27 = vpop.f32.mrb[22].mxu0 }
 0x422   : > { %v2980_v28 = vpop.f32.mrb[23].mxu0 }
 0x42b   : > { %v1491_v29 = vpop.xlane.xlu0 %1490 }
 0x42c   : > { %1634 = vrot.lane.b32.xlu1 %v3542_v48, %s3295_s27  ;;  %v1513_v30 = vsub.f32 %v3604_v31, %v1491_v29 }
 0x42e   : > { %v1521_v32 = vmul.f32 1.442695, %v1513_v30 }
 0x430   : > { %1682 = vrot.lane.b32.xlu1 %v3540_v47, %s3295_s27  ;;  %3158 = vpow2.f32 %v1521_v32 }
 0x431   : > { %1585 = vrot.lane.b32.xlu0 %v3537_v44, %s3295_s27  ;;  %v1510_v44 = vsel %vm1099_vm3, %v3662_v35, -inf }
 0x43a   : > { %v3657_v33 = vpop.eup %3158 }
 0x43b   : > { %v1537_v48 = vsel %vm1099_vm3, %v3657_v33, 0.0 }
 0x450   : > { %1538 = vadd.xlane.f32.xlu0 %v1537_v48 }
 0x454   : > { %1511 = vmax.xlane.f32.xlu1 %v1510_v44 }
 0x465   : > { %1730 = vrot.lane.b32.xlu1 %v3546_v51, %s3295_s27 }
 0x498   : > { %v1497_v47 = vpop.xlane.xlu0 %1496  ;;  %v1494_v31 = vpop.xlane.xlu1 %1493 }
 0x499   : > { %v1515_v36 = vsub.f32 %v3616_v41, %v1497_v47  ;;  %v1514_v37 = vsub.f32 %v3614_v40, %v1494_v31 }
 0x49b   : > { %v1525_v38 = vmul.f32 1.442695, %v1515_v36  ;;  %v1523_v39 = vmul.f32 1.442695, %v1514_v37 }
 0x49d   : > { %3160 = vpow2.f32 %v1525_v38 }
 0x49e   : > { %3162 = vpow2.f32 %v1523_v39 }
 0x4a0   : > { %v1500_v42 = vpop.xlane.xlu0 %1499 }
 0x4a1   : > { %v1516_v59 = vsub.f32 %v3628_v62, %v1500_v42 }
 0x4a3   : > { %v1527_v0 = vmul.f32 1.442695, %v1516_v59 }
 0x4a4   : > { %v1503_v43 = vpop.xlane.xlu0 %1502 }
 0x4a5   : > { %v1517_v58 = vsub.f32 %v3630_v5, %v1503_v43 }
 0x4a7   : > { %v3672_v45 = vpop.eup %3160  ;;  %v1529_v61 = vmul.f32 1.442695, %v1517_v58 }
 0x4a8   : > { %v3674_v46 = vpop.eup %3162  ;;  %v1509_v49 = vpop.xlane.xlu0 %1508  ;;  %v1543_v51 = vsel %vm1099_vm3, %v3672_v45, 0.0 }
 0x4a9   : > { %v1506_v50 = vpop.xlane.xlu1 %1505  ;;  %1544 = vadd.xlane.f32.xlu0 %v1543_v51  ;;  %v1540_v41 = vsel %vm1099_vm3, %v3674_v46, 0.0  ;;  %v1519_v63 = vsub.f32 %v3642_v14, %v1509_v49  ;;  %3164 = vpow2.f32 %v1529_v61 }
 0x4aa   : > { %1541 = vadd.xlane.f32.xlu1 %v1540_v41  ;;  %v1518_v1 = vsub.f32 %v3644_v15, %v1506_v50  ;;  %3166 = vpow2.f32 %v1527_v0 }
 0x4ab   : > { %v1533_v2 = vmul.f32 1.442695, %v1519_v63 }
 0x4ac   : > { %v1586_v40 = vpop.permute.xlu0 %1585  ;;  %v1531_v6 = vmul.f32 1.442695, %v1518_v1 }
 0x4ad   : > { %v1635_v53 = vpop.permute.xlu1 %1634  ;;  %v1592_v54 = vsel %vm1590_vm4, %v1586_v40, 0  ;;  %3168 = vpow2.f32 %v1533_v2 }
 0x4ae   : > { %v1640_v56 = vsel %vm1590_vm4, %v1635_v53, 0  ;;  %2982 = vmatpush3.bf16.msra.mxu1 %v1592_v54  ;;  %3170 = vpow2.f32 %v1531_v6 }
 0x4af   : > { %2988 = vmatpush3.bf16.msra.mxu0 %v1640_v56  ;;  %2993 = vmatprep.subr.bf16.mxu1 %v3289_v18 }
 0x4b0   : > { %2999 = vmatprep.subr.bf16.mxu0 %v3289_v18 }
 0x4bb   : > { %1826 = vrot.lane.b32.xlu1 %v3555_v57, %s3295_s27  ;;  %v3692_v57 = vpop.eup %3164 }
 0x4bc   : > { %v3694_v7 = vpop.eup %3166  ;;  %v1549_v62 = vsel %vm1099_vm3, %v3692_v57, 0.0 }
 0x4bd   : > { %v3698_v8 = vpop.eup %3168  ;;  %v1546_v9 = vsel %vm1099_vm3, %v3694_v7, 0.0 }
 0x4be   : > { %v3702_v10 = vpop.eup %3170  ;;  %v1555_v12 = vsel %vm1099_vm3, %v3698_v8, 0.0 }
 0x4bf   : > { %1778 = vrot.lane.b32.xlu0 %v3548_v52, %s3295_s27  ;;  %v1683_v52 = vpop.permute.xlu1 %1682  ;;  %v1552_v14 = vsel %vm1099_vm3, %v3702_v10, 0.0 }
 0x4c0   : > { %v1688_v20 = vsel %vm1590_vm4, %v1683_v52, 0 }
 0x4dd   : > { %v1539_v5 = vpop.xlane.xlu0 %1538 }
 0x4de   : > { %3172 = vrcp.f32 %v1539_v5  ;;  %1550 = vadd.xlane.f32.xlu0 %v1549_v62 }
 0x4df   : > { %1547 = vadd.xlane.f32.xlu1 %v1546_v9 }
 0x4e1   : > { %v1512_v11 = vpop.xlane.xlu1 %1511 }
 0x4e2   : > { %v1520_v13 = vsub.f32 %v3662_v35, %v1512_v11  ;;  %1556 = vadd.xlane.f32.xlu0 %v1555_v12 }
 0x4e3   : > { %1553 = vadd.xlane.f32.xlu1 %v1552_v14  ;;  %v3142_v14 = vld [vmem:[%s3460_s15] sm:$0xff]  }
 0x4e4   : > { %v1535_v15 = vmul.f32 1.442695, %v1520_v13 }
 0x4e5   : > { %v1731_v23 = vpop.permute.xlu1 %1730 }
 0x4e6   : > { %3174 = vpow2.f32 %v1535_v15 }
 0x4e8   : > { %v3173_v16 = vpop.eup %3172 }
 0x4e9   : > { %v1569_v17 = vmul.f32 %v3173_v16, %v3657_v33 }
 0x4eb   : > { %v1577_v19 = vpack.c.bf16 %v1569_v17, %v1569_v17 }
 0x4ed   : > { %2984 = vmatmul.mubr.msk.bf16.vlgmr.msra.gmra.mrb[12].mxu1 %vm1099_vm3, %v1577_v19 }
 0x4ee   : > { %2994 = vmatpush3.bf16.msra.mxu1 %v1688_v20  ;;  %2995 = vmatprep.mubr.msk.bf16.mxu1 %vm3290_vm2, %v3289_v18 }
 0x4ef   : > { %3005 = vmatprep.subr.bf16.mxu1 %v3289_v18 }
 0x4f0   : > { %v3715_v21 = vpop.eup %3174 }
 0x4f1   : > { %v1558_v22 = vsel %vm1099_vm3, %v3715_v21, 0.0 }
 0x4f2   : > { %1559 = vadd.xlane.f32.xlu1 %v1558_v22 }
 0x4f8   : > { %1874 = vrot.lane.b32.xlu0 %v3552_v55, %s3295_s27  ;;  %v1736_v55 = vsel %vm1590_vm4, %v1731_v23, 0 }
 0x503   : > { %1922 = vrot.lane.b32.xlu1 %v3560_v60, %s3295_s27 }
 0x536   : > { %v1545_v24 = vpop.xlane.xlu0 %1544 }
 0x537   : > { %3176 = vrcp.f32 %v1545_v24  ;;  %v1542_v25 = vpop.xlane.xlu1 %1541 }
 0x538   : > { %3178 = vrcp.f32 %v1542_v25 }
 0x53a   : > { %v1779_v30 = vpop.permute.xlu0 %1778 }
 0x53b   : > { %v1784_v34 = vsel %vm1590_vm4, %v1779_v30, 0  ;;  %v1827_v60 = vpop.permute.xlu1 %1826 }
 0x53c   : > { %v1832_v50 = vsel %vm1590_vm4, %v1827_v60, 0 }
 0x541   : > { %v3177_v26 = vpop.eup %3176 }
 0x542   : > { %v3179_v27 = vpop.eup %3178  ;;  %v1571_v28 = vmul.f32 %v3177_v26, %v3672_v45 }
 0x543   : > { %v1570_v29 = vmul.f32 %v3179_v27, %v3674_v46 }
 0x544   : > { %v1579_v32 = vpack.c.bf16 %v1571_v28, %v1571_v28 }
 0x545   : > { %v1578_v33 = vpack.c.bf16 %v1570_v29, %v1570_v29 }
 0x546   : > { %2996 = vmatmul.mubr.msk.bf16.vlgmr.msra.gmra.mrb[16].mxu1 %vm1099_vm3, %v1579_v32  ;;  %v3143_v32 = vld [vmem:[%s3460_s15 + $0x8] sm:$0xff]  }
 0x547   : > { %2990 = vmatmul.mubr.msk.bf16.vlgmr.msra.gmra.mrb[24].mxu0 %vm1099_vm3, %v1578_v33  ;;  %3006 = vmatpush3.bf16.msra.mxu1 %v1784_v34 }
 0x548   : > { %3000 = vmatpush3.bf16.msra.mxu0 %v1736_v55  ;;  %3001 = vmatprep.mubr.msk.bf16.mxu0 %vm3290_vm2, %v3289_v18 }
 0x549   : > { %3007 = vmatprep.mubr.msk.bf16.mxu1 %vm3290_vm2, %v3289_v18  ;;  %3011 = vmatprep.subr.bf16.mxu0 %v3289_v18 }
 0x54a   : > { %3017 = vmatprep.subr.bf16.mxu1 %v3289_v18 }
 0x56b   : > { %v1551_v35 = vpop.xlane.xlu0 %1550 }
 0x56c   : > { %3180 = vrcp.f32 %v1551_v35  ;;  %v1548_v48 = vpop.xlane.xlu1 %1547 }
 0x56d   : > { %3182 = vrcp.f32 %v1548_v48 }
 0x56f   : > { %v1557_v44 = vpop.xlane.xlu0 %1556 }
 0x570   : > { %3184 = vrcp.f32 %v1557_v44  ;;  %v1554_v47 = vpop.xlane.xlu1 %1553 }
 0x571   : > { %3186 = vrcp.f32 %v1554_v47 }
 0x573   : > { %v1875_v39 = vpop.permute.xlu0 %1874 }
 0x574   : > { %v1880_v49 = vsel %vm1590_vm4, %v1875_v39, 0 }
 0x576   : > { %v3181_v31 = vpop.eup %3180 }
 0x577   : > { %v3183_v36 = vpop.eup %3182  ;;  %v1573_v37 = vmul.f32 %v3181_v31, %v3692_v57 }
 0x578   : > { %v1572_v38 = vmul.f32 %v3183_v36, %v3694_v7 }
 0x579   : > { %v1581_v42 = vpack.c.bf16 %v1573_v37, %v1573_v37 }
 0x57a   : > { %v3185_v43 = vpop.eup %3184  ;;  %v1580_v45 = vpack.c.bf16 %v1572_v38, %v1572_v38 }
 0x57b   : > { %v3187_v46 = vpop.eup %3186  ;;  %3008 = vmatmul.mubr.msk.bf16.vlgmr.msra.gmra.mrb[20].mxu1 %vm1099_vm3, %v1581_v42  ;;  %v1575_v51 = vmul.f32 %v3185_v43, %v3698_v8 }
 0x57c   : > { %3002 = vmatmul.mubr.msk.bf16.vlgmr.msra.gmra.mrb[28].mxu0 %vm1099_vm3, %v1580_v45  ;;  %3018 = vmatpush3.bf16.msra.mxu1 %v1880_v49  ;;  %v1574_v41 = vmul.f32 %v3187_v46, %v3702_v10 }
 0x57d   : > { %3012 = vmatpush3.bf16.msra.mxu0 %v1832_v50  ;;  %3013 = vmatprep.mubr.msk.bf16.mxu0 %vm3290_vm2, %v3289_v18  ;;  %v1583_v53 = vpack.c.bf16 %v1575_v51, %v1575_v51 }
 0x57e   : > { %3019 = vmatprep.mubr.msk.bf16.mxu1 %vm3290_vm2, %v3289_v18  ;;  %3023 = vmatprep.subr.bf16.mxu0 %v3289_v18  ;;  %v1582_v54 = vpack.c.bf16 %v1574_v41, %v1574_v41 }
 0x57f   : > { %v1560_v40 = vpop.xlane.xlu1 %1559  ;;  %3029 = vmatprep.subr.bf16.mxu1 %v3289_v18 }
 0x580   : > { %3188 = vrcp.f32 %v1560_v40  ;;  %v2815_v40 = vld [vmem:[%s3997_s20] ss:$0 sm:$0xff] }
 0x583   : > { %3020 = vmatmul.mubr.msk.bf16.vlgmr.msra.gmra.mrb[24].mxu1 %vm1099_vm3, %v1583_v53  ;;  %v1923_v56 = vpop.permute.xlu1 %1922 }
 0x584   : > { %3014 = vmatmul.mubr.msk.bf16.vlgmr.msra.gmra.mrb[32].mxu0 %vm1099_vm3, %v1582_v54  ;;  %v1928_v58 = vsel %vm1590_vm4, %v1923_v56, 0  ;;  %3033 = vmatprep.mubr.msk.bf16.mxu1 %vm3290_vm2, %v3289_v18 }
 0x585   : > { %3024 = vmatpush3.bf16.msra.mxu0 %v1928_v58  ;;  %3025 = vmatprep.mubr.msk.bf16.mxu0 %vm3290_vm2, %v3289_v18 }
 0x586   : > { %3037 = vmatprep.subr.bf16.mxu0 %v3289_v18  ;;  %3030 = vmatpush3.bf16.msra.mxu1 %v3142_v14 }
 0x587   : > { %3031 = vmatprep.subr.bf16.mxu1 %v3289_v18 }
 0x58a   : > { %v3189_v59 = vpop.eup %3188  ;;  %3032 = vmatpush3.bf16.msra.mxu1 %v3143_v32  ;;  %v3147_v32 = vld [vmem:[%s3487_s2 + $0x8] sm:$0xff]  }
 0x58b   : > { %v1576_v61 = vmul.f32 %v3189_v59, %v3715_v21  ;;  %3045 = vmatprep.subr.bf16.mxu1 %v3289_v18 }
 0x58d   : > { %v1584_v63 = vpack.c.bf16 %v1576_v61, %v1576_v61 }
 0x58f   : > { %3026 = vmatmul.mubr.msk.bf16.vlgmr.msra.gmra.mrb[36].mxu0 %vm1099_vm3, %v1584_v63 }
 0x590   : > { %3041 = vmatprep.mubr.msk.bf16.mxu0 %vm3290_vm2, %v3289_v18 }
 0x5c0   : > { %v1628_v0 = vpop.f32.mrb[12].mxu1 }
 0x5c1   : > { %v2985_v1 = vpop.f32.mrb[13].mxu1 }
 0x5c2   : > { %v1631_v2 = vpop.f32.mrb[14].mxu1 }
 0x5c3   : > { %v2986_v6 = vpop.f32.mrb[15].mxu1 }
 0x619   : > { %v1724_v57 = vpop.f32.mrb[16].mxu1 }
 0x61a   : > { %v1676_v7 = vpop.f32.mrb[24].mxu0  ;;  %v2997_v52 = vpop.f32.mrb[17].mxu1 }
 0x61b   : > { %v2991_v5 = vpop.f32.mrb[25].mxu0  ;;  %v1727_v62 = vpop.f32.mrb[18].mxu1 }
 0x61c   : > { %v1679_v8 = vpop.f32.mrb[26].mxu0  ;;  %v2998_v9 = vpop.f32.mrb[19].mxu1 }
 0x61d   : > { %v2992_v10 = vpop.f32.mrb[27].mxu0 }
 0x61e   : > { %v3144_v10 = vld [vmem:[%s3477_s5] sm:$0xff]  }
 0x61f   : > { %3038 = vmatpush3.bf16.msra.mxu0 %v3144_v10 }
 0x620   : > { %3039 = vmatprep.subr.bf16.mxu0 %v3289_v18 }
 0x64e   : > { %v1820_v11 = vpop.f32.mrb[20].mxu1 }
 0x64f   : > { %v1772_v12 = vpop.f32.mrb[28].mxu0  ;;  %v3009_v13 = vpop.f32.mrb[21].mxu1 }
 0x650   : > { %v3003_v15 = vpop.f32.mrb[29].mxu0  ;;  %v1823_v16 = vpop.f32.mrb[22].mxu1 }
 0x651   : > { %v1775_v17 = vpop.f32.mrb[30].mxu0  ;;  %v3010_v19 = vpop.f32.mrb[23].mxu1 }
 0x652   : > { %v3004_v20 = vpop.f32.mrb[31].mxu0 }
 0x656   : > { %v1916_v21 = vpop.f32.mrb[24].mxu1 }
 0x657   : > { %v1868_v22 = vpop.f32.mrb[32].mxu0  ;;  %v3130_v23 = vpack.i.bf16 %v1916_v21, %v1724_v57  ;;  %v3021_v24 = vpop.f32.mrb[25].mxu1  ;;  %v2819_v21 = vld [vmem:[%s848_s7] ss:$0 sm:$0xff] }
 0x658   : > { %v3125_v25 = vpack.i.bf16 %v1868_v22, %v1676_v7  ;;  %v3015_v26 = vpop.f32.mrb[33].mxu0  ;;  %v1919_v27 = vpop.f32.mrb[26].mxu1 }
 0x659   : > { %v1871_v28 = vpop.f32.mrb[34].mxu0  ;;  %v3022_v29 = vpop.f32.mrb[27].mxu1  ;;  %3131 = vrot.lane.b32.xlu1 %v3130_v23, %s3296_s25 }
 0x65a   : > { %3126 = vrot.lane.b32.xlu0 %v3125_v25, %s3297_s22  ;;  %v3016_v30 = vpop.f32.mrb[35].mxu0  ;;  %v2820_v25 = vld [vmem:[%s851_s0] ss:$0 sm:$0xff] }
 0x65b   : > { %v3146_v30 = vld [vmem:[%s3487_s2] sm:$0xff]  }
 0x662   : > { %v1964_v33 = vpop.f32.mrb[36].mxu0 }
 0x663   : > { %v3135_v34 = vpack.i.bf16 %v1964_v33, %v1772_v12  ;;  %v3027_v55 = vpop.f32.mrb[37].mxu0  ;;  %v3148_v33 = vld [vmem:[%s3487_s2 + $0x10] sm:$0xff]  }
 0x664   : > { %v1967_v60 = vpop.f32.mrb[38].mxu0  ;;  %v3150_v55 = vld [vmem:[%s3487_s2 + $0x20] sm:$0xff]  }
 0x665   : > { %3136 = vrot.lane.b32.xlu0 %v3135_v34, %s3298_s4  ;;  %v3028_v35 = vpop.f32.mrb[39].mxu0  ;;  %v3149_v34 = vld [vmem:[%s3487_s2 + $0x18] sm:$0xff]   ;;  %v3151_v60 = vld [vmem:[%s3487_s2 + $0x28] sm:$0xff]   ;;  %s4001_s4 = sld [smem:[#allocation20_spill]] (!%p2836_p5) }
 0x666   : > { %v3152_v35 = vld [vmem:[%s3487_s2 + $0x30] sm:$0xff]  }
 0x66b   : > { %s4002_s15 = smov (!%p2836_p5), %s4001_s4 }
 0x6cb   : > { %v3132_v44 = vpop.permute.xlu1 %3131 }
 0x6cc   : > { %v3127_v48 = vpop.permute.xlu0 %3126  ;;  %v3134_v36 = vunpack.i.h.bf16 %v3132_v44  ;;  %v3133_v37 = vunpack.i.l.bf16 %v3132_v44  ;;  %v2821_v44 = vld [vmem:[%s859_s21] ss:$0 sm:$0xff]  ;;  %s3999_s21 = sld [smem:[#allocation18_spill]] (!%p2836_p5) }
 0x6cd   : > { %v3129_v47 = vunpack.i.h.bf16 %v3127_v48  ;;  %v3128_v31 = vunpack.i.l.bf16 %v3127_v48  ;;  %v3153_v48 = vld [vmem:[%s3487_s2 + $0x38] sm:$0xff]  }
 0x6cf   : > { %v1999_v38 = vsel %vm1099_vm3, %v1820_v11, %v3129_v47  ;;  %v1982_v39 = vsel %vm1099_vm3, %v1628_v0, %v3128_v31  ;;  %v3145_v11 = vld [vmem:[%s3477_s5 + $0x8] sm:$0xff]   ;;  %s4003_s5 = sld [smem:[#allocation21_spill]] (!%p2836_p5) }
 0x6d0   : > { %v1984_v46 = vsel %vm1983_vm5, %v1982_v39, %v3133_v37  ;;  %v2000_v49 = vsel %vm1983_vm5, %v1999_v38, %v3134_v36  ;;  %3040 = vmatpush3.bf16.msra.mxu0 %v3145_v11 }
 0x6d7   : > { %v3137_v42 = vpop.permute.xlu0 %3136 }
 0x6d8   : > { %v3139_v43 = vunpack.i.h.bf16 %v3137_v42  ;;  %v3138_v45 = vunpack.i.l.bf16 %v3137_v42 }
 0x6da   : > { %v2001_v50 = vsel %vm1985_vm6, %v2000_v49, %v3139_v43  ;;  %v1986_v51 = vsel %vm1985_vm6, %v1984_v46, %v3138_v45 }
 0x6db   : > { %v2002_v41 = vpack.c.bf16 %v2001_v50, %v1986_v51 }
 0x6dd   : > { %3034 = vmatmul.mubr.msk.bf16.vlgmr.msra.gmra.mrb[28].mxu1 %vm884_vm1, %v2002_v41 }
 0x6de   : > { %3061 = vmatprep.mubr.msk.bf16.mxu1 %vm3290_vm2, %v3289_v18  ;;  %3046 = vmatpush3.bf16.msra.mxu1 %v3146_v30 }
 0x6df   : > { %3047 = vmatprep.subr.bf16.mxu1 %v3289_v18 }
 0x6e2   : > { %3048 = vmatpush3.bf16.msra.mxu1 %v3147_v32 }
 0x6e3   : > { %3049 = vmatprep.subr.bf16.mxu1 %v3289_v18 }
 0x6e6   : > { %3050 = vmatpush3.bf16.msra.mxu1 %v3148_v33 }
 0x6e7   : > { %3051 = vmatprep.subr.bf16.mxu1 %v3289_v18 }
 0x6ea   : > { %3052 = vmatpush3.bf16.msra.mxu1 %v3149_v34 }
 0x6eb   : > { %3053 = vmatprep.subr.bf16.mxu1 %v3289_v18 }
 0x6ee   : > { %3054 = vmatpush3.bf16.msra.mxu1 %v3150_v55 }
 0x6ef   : > { %3055 = vmatprep.subr.bf16.mxu1 %v3289_v18 }
 0x6f2   : > { %3056 = vmatpush3.bf16.msra.mxu1 %v3151_v60 }
 0x6f3   : > { %3057 = vmatprep.subr.bf16.mxu1 %v3289_v18 }
 0x6f6   : > { %3058 = vmatpush3.bf16.msra.mxu1 %v3152_v35 }
 0x6f7   : > { %3059 = vmatprep.subr.bf16.mxu1 %v3289_v18 }
 0x6fa   : > { %3060 = vmatpush3.bf16.msra.mxu1 %v3153_v48 }
 0x7b0   : > { %v2063_v53 = vpop.f32.mrb[28].mxu1 }
 0x7b1   : > { %v2064_v54 = vadd.f32 %v2815_v40, %v2063_v53  ;;  %v3035_v56 = vpop.f32.mrb[29].mxu1 }
 0x7b2   : > { %v2066_v58 = vpop.f32.mrb[30].mxu1 }
 0x7b3   : > { %v3777_v59 = vadd.f32 %v2064_v54, %v3497_v3  ;;  %v2067_v61 = vadd.f32 %v2815_v40, %v2066_v58  ;;  %v3036_v63 = vpop.f32.mrb[31].mxu1  ;;  %v2827_v54 = vld [vmem:[%s867_s29] ss:$0 sm:$0xff]  ;;  %s3998_s29 = sld [smem:[#allocation12_spill]] (!%p2836_p5) }
 0x7b5   : > { %v3780_v0 = vadd.f32 %v2067_v61, %v3499_v4  ;;  %v2074_v1 = vsel %vm884_vm1, %v3777_v59, 0.0 }
 0x7b6   : > { %2075 = vadd.xlane.f32.xlu1 %v2074_v1 }
 0x7b7   : > { %v2077_v2 = vsel %vm884_vm1, %v3780_v0, 0.0 }
 0x7b8   : > { %2078 = vadd.xlane.f32.xlu0 %v2077_v2 }
 0x843   : > { %v2076_v6 = vpop.xlane.xlu1 %2075 }
 0x844   : > { %v2080_v57 = vmul.f32 0.03125, %v2076_v6 }
 0x845   : > { %v2079_v7 = vpop.xlane.xlu0 %2078 }
 0x846   : > { %v2082_v3 = vsub.f32 %v3777_v59, %v2080_v57  ;;  %v2081_v52 = vmul.f32 0.03125, %v2079_v7  ;;  %v2319_v7 = vld [vmem:[%s3998_s29] sm:$0xff] (!%p2836_p5) }
 0x848   : > { %v2083_v5 = vsub.f32 %v3780_v0, %v2081_v52  ;;  %v2084_v4 = vmul.f32 %v2082_v3, %v2082_v3  ;;  %v3203_v52 = vld [vmem:[%s3957_s18] sm:$0xff] (!%p2836_p5)  }
 0x84a   : > { %v2086_v62 = vsel %vm884_vm1, %v2084_v4, 0.0  ;;  %v2085_v8 = vmul.f32 %v2083_v5, %v2083_v5 }
 0x84b   : > { %2087 = vadd.xlane.f32.xlu0 %v2086_v62 }
 0x84c   : > { %v2089_v9 = vsel %vm884_vm1, %v2085_v8, 0.0 }
 0x84f   : > { %2090 = vadd.xlane.f32.xlu0 %v2089_v9 }
 0x8d8   : > { %v2088_v12 = vpop.xlane.xlu0 %2087 }
 0x8d9   : > { %v2092_v13 = vmul.f32 0.03125, %v2088_v12 }
 0x8db   : > { %v2094_v14 = vadd.f32 1e-05, %v2092_v13 }
 0x8dc   : > { %v2091_v15 = vpop.xlane.xlu0 %2090 }
 0x8dd   : > { %3190 = vrsqrt.f32 %v2094_v14  ;;  %v2093_v16 = vmul.f32 0.03125, %v2091_v15 }
 0x8df   : > { %v2095_v17 = vadd.f32 1e-05, %v2093_v16 }
 0x8e1   : > { %3192 = vrsqrt.f32 %v2095_v17 }
 0x8e7   : > { %v3191_v19 = vpop.eup %3190 }
 0x8e8   : > { %v2098_v20 = vmul.f32 %v3191_v19, %v2082_v3  ;;  %v3299_v3 = vmov (!%p2836_p5), 0  }
 0x8e9   : > { %3202 = vset.pattern.permute.xlu0 (!%p2836_p5), %v3299_v3 }
 0x8ea   : > { %v2106_v23 = vmul.f32 %v2819_v21, %v2098_v20  ;;  %2323 = vperm.xlu0 (!%p2836_p5), %3202, %v2319_v7  }
 0x8eb   : > { %v3193_v22 = vpop.eup %3192 }
 0x8ec   : > { %v2099_v24 = vmul.f32 %v3193_v22, %v2083_v5  ;;  %v2114_v27 = vadd.f32 %v2820_v25, %v2106_v23  ;;  %v3204_v5 = vld [vmem:[%s3957_s18 + $0x8] sm:$0xff] (!%p2836_p5)  }
 0x8ee   : > { %v2107_v26 = vmul.f32 %v2819_v21, %v2099_v24  ;;  %v3205_v24 = vld [vmem:[%s3956_s17] sm:$0xff] (!%p2836_p5)  }
 0x8f0   : > { %v2115_v28 = vadd.f32 %v2820_v25, %v2107_v26  ;;  %v3206_v25 = vld [vmem:[%s3956_s17 + $0x8] sm:$0xff] (!%p2836_p5)   ;;  %v2842_v26 = vld [vmem:[%s3958_s19] ss:$0 sm:$0xff] (!%p2836_p5) }
 0x8f2   : > { %v2116_v29 = vpack.c.bf16 %v2115_v28, %v2114_v27 }
 0x8f4   : > { %3042 = vmatmul.mubr.msk.bf16.vlgmr.msra.gmra.mrb[40].mxu0 %vm884_vm1, %v2116_v29 }
 0x969   : > { %v2324_v4 = vpop.permute.xlu0 (!%p2836_p5), %2323 }
 0x9c7   : > { %v2177_v47 = vpop.f32.mrb[40].mxu0 }
 0x9c8   : > { %v2178_v31 = vadd.f32 %v2821_v44, %v2177_v47  ;;  %v3043_v36 = vpop.f32.mrb[41].mxu0 }
 0x9c9   : > { %v2180_v37 = vpop.f32.mrb[42].mxu0 }
 0x9ca   : > { %v2825_v38 = vmul.f32 -1.442695, %v2178_v31  ;;  %v2181_v39 = vadd.f32 %v2821_v44, %v2180_v37  ;;  %v3044_v42 = vpop.f32.mrb[43].mxu0 }
 0x9cc   : > { %3194 = vpow2.f32 %v2825_v38  ;;  %v2826_v43 = vmul.f32 -1.442695, %v2181_v39 }
 0x9ce   : > { %3196 = vpow2.f32 %v2826_v43 }
 0x9d6   : > { %v3195_v45 = vpop.eup %3194 }
 0x9d7   : > { %v2190_v18 = vadd.f32 1.0, %v3195_v45 }
 0x9d8   : > { %v3197_v46 = vpop.eup %3196 }
 0x9d9   : > { %3198 = vrcp.f32 %v2190_v18  ;;  %v2191_v49 = vadd.f32 1.0, %v3197_v46 }
 0x9db   : > { %3200 = vrcp.f32 %v2191_v49 }
 0x9e3   : > { %v3199_v50 = vpop.eup %3198 }
 0x9e4   : > { %v2196_v41 = vmul.f32 %v3199_v50, %v2178_v31 }
 0x9e5   : > { %v3201_v51 = vpop.eup %3200 }
 0x9e6   : > { %v2197_v40 = vmul.f32 %v3201_v51, %v2181_v39  ;;  %v2837_v51 = vld [vmem:[%s3999_s21] ss:$0 sm:$0xff] (!%p2836_p5) }
 0x9e8   : > { %v2198_v53 = vpack.c.bf16 %v2197_v40, %v2196_v41 }
 0x9ea   : > { %3062 = vmatmul.mubr.bf16.vlgmr.msra.gmra.mrb[32].mxu1 %v2198_v53 }
 0xabd   : > { %v2304_v56 = vpop.f32.mrb[32].mxu1 }
 0xabe   : > { %v2305_v58 = vadd.f32 %v2827_v54, %v2304_v56  ;;  %v3063_v61 = vpop.f32.mrb[33].mxu1  ;;  %2318 = sbr.rel (%p2836_p5) target bundleno = 3423 (0xd5f), region = 116 }
 0xabf   : > { %v2307_v63 = vpop.f32.mrb[34].mxu1 }
 0xac0   : > { %v2311_v1 = vadd.f32 %v2305_v58, %v3777_v59  ;;  %v2308_v2 = vadd.f32 %v2827_v54, %v2307_v63  ;;  %v3064_v6 = vpop.f32.mrb[35].mxu1  ;;  %v2320_v59 = vld [vmem:[%s3998_s29 + $0x8] sm:$0xff] (!%p2836_p5)  ;;  %v2838_v54 = vld [vmem:[%s4000_s3] ss:$0 sm:$0xff] (!%p2836_p5) }
 0xac1   : > { %2328 = vperm.xlu0 (!%p2836_p5), %3202, %v2320_v59   ;;  %v3207_v63 = vld [vmem:[%s4001_s4] sm:$0xff] (!%p2836_p5)  }
 0xac2   : > { %2313 = vst.msk [vmem:[#allocation2] sm:$0xff] %vm884_vm1, %v2311_v1  ;;  %v2312_v57 = vadd.f32 %v2308_v2, %v3780_v0  ;;  %v3300_v0 = vmov (!%p2836_p5), 0.0   ;;  %v2331_v62 = vmul.f32 (!%p2836_p5), %v2324_v4, %v2311_v1  ;;  %v3208_v2 = vld [vmem:[%s4002_s15 + $0x8] sm:$0xff] (!%p2836_p5)   ;;  %v2848_v59 = vld [vmem:[%s4003_s5] ss:$0 sm:$0xff] (!%p2836_p5) }
 0xac3   : > { %3073 = vmatprep.subr.bf16.mxu1 (!%p2836_p5), %v3300_v0  ;;  %3065 = vmatprep.subr.bf16.mxu0 (!%p2836_p5), %v3300_v0 }
 0xac4   : > { %2314 = vst.msk [vmem:[#allocation2 + $0x8] sm:$0xff] %vm884_vm1, %v2312_v57  ;;  %3074 = vmatpush3.bf16.msra.mxu1 (!%p2836_p5), %v3203_v52  ;;  %3077 = vmatprep.mubr.msk.bf16.mxu1 (!%p2836_p5), %vm3301_vm7, %v3300_v0  ;;  %v2335_v8 = vsel (!%p2836_p5), %vm884_vm1, %v2331_v62, 0.0 }
 0xac5   : > { %3075 = vmatprep.subr.bf16.mxu1 %v3300_v0  ;;  %3069 = vmatprep.mubr.msk.bf16.mxu0 %vm3301_vm7, %v3300_v0 }
 0xac6   : > { %2336 = vadd.xlane.f32.xlu1 %v2335_v8  ;;  %3066 = vmatpush3.bf16.msra.mxu0 %v3205_v24 }
 0xac7   : > { %3067 = vmatprep.subr.bf16.mxu0 %v3300_v0 }
 0xac8   : > { %3076 = vmatpush3.bf16.msra.mxu1 %v3204_v5 }
 0xaca   : > { %3068 = vmatpush3.bf16.msra.mxu0 %v3206_v25 }
 0xacb   : > { %3081 = vmatprep.subr.bf16.mxu0 %v3300_v0 }
 0xb40   : > { %v2329_v9 = vpop.permute.xlu0 %2328 }
 0xb41   : > { %v2332_v10 = vmul.f32 %v2329_v9, %v2312_v57 }
 0xb43   : > { %v2338_v11 = vsel %vm884_vm1, %v2332_v10, 0.0  ;;  %v2440_v12 = vpack.c.bf16 %v2332_v10, %v2331_v62 }
 0xb44   : > { %2339 = vadd.xlane.f32.xlu1 %v2338_v11 }
 0xb45   : > { %3078 = vmatmul.mubr.msk.bf16.vlgmr.msra.gmra.mrb[0].mxu1 %vm884_vm1, %v2440_v12 }
 0xb53   : > { %v2337_v13 = vpop.xlane.xlu1 %2336 }
 0xb54   : > { %v2341_v14 = vmul.f32 0.03125, %v2337_v13 }
 0xb56   : > { %v2343_v15 = vsub.f32 %v2331_v62, %v2341_v14 }
 0xb58   : > { %v2345_v19 = vmul.f32 %v2343_v15, %v2343_v15 }
 0xb5a   : > { %v2347_v21 = vsel %vm884_vm1, %v2345_v19, 0.0 }
 0xb5b   : > { %2348 = vadd.xlane.f32.xlu0 %v2347_v21 }
 0xbd1   : > { %v2340_v16 = vpop.xlane.xlu1 %2339 }
 0xbd2   : > { %v2342_v17 = vmul.f32 0.03125, %v2340_v16 }
 0xbd4   : > { %v2344_v20 = vsub.f32 %v2332_v10, %v2342_v17 }
 0xbd6   : > { %v2346_v22 = vmul.f32 %v2344_v20, %v2344_v20 }
 0xbd8   : > { %v2350_v23 = vsel %vm884_vm1, %v2346_v22, 0.0 }
 0xbd9   : > { %2351 = vadd.xlane.f32.xlu1 %v2350_v23 }
 0xbe8   : > { %v2349_v39 = vpop.xlane.xlu0 %2348 }
 0xbe9   : > { %v2353_v42 = vmul.f32 0.03125, %v2349_v39 }
 0xbeb   : > { %v2355_v43 = vadd.f32 1e-05, %v2353_v42 }
 0xc18   : > { %v2501_v27 = vpop.f32.mrb[0].mxu1 }
 0xc19   : > { %v2502_v28 = vadd.f32 %v2842_v26, %v2501_v27  ;;  %v3079_v29 = vpop.f32.mrb[1].mxu1 }
 0xc1a   : > { %v2504_v30 = vpop.f32.mrb[2].mxu1 }
 0xc1b   : > { %v2846_v32 = vmul.f32 -1.442695, %v2502_v28  ;;  %v2505_v33 = vadd.f32 %v2842_v26, %v2504_v30  ;;  %v3080_v34 = vpop.f32.mrb[3].mxu1 }
 0xc1d   : > { %3209 = vpow2.f32 %v2846_v32  ;;  %v2847_v55 = vmul.f32 -1.442695, %v2505_v33 }
 0xc1f   : > { %3211 = vpow2.f32 %v2847_v55 }
 0xc27   : > { %v3210_v60 = vpop.eup %3209 }
 0xc28   : > { %v2514_v35 = vadd.f32 1.0, %v3210_v60 }
 0xc29   : > { %v3212_v48 = vpop.eup %3211 }
 0xc2a   : > { %3213 = vrcp.f32 %v2514_v35  ;;  %v2515_v44 = vadd.f32 1.0, %v3212_v48 }
 0xc2c   : > { %3215 = vrcp.f32 %v2515_v44 }
 0xc2d   : > { %3217 = vrsqrt.f32 %v2355_v43 }
 0xc34   : > { %v3214_v47 = vpop.eup %3213 }
 0xc35   : > { %v2520_v36 = vmul.f32 %v3214_v47, %v2502_v28 }
 0xc36   : > { %v3216_v31 = vpop.eup %3215 }
 0xc37   : > { %v2521_v37 = vmul.f32 %v3216_v31, %v2505_v33  ;;  %v3218_v49 = vpop.eup %3217 }
 0xc38   : > { %v2359_v50 = vmul.f32 %v3218_v49, %v2343_v15 }
 0xc39   : > { %v2522_v38 = vpack.c.bf16 %v2521_v37, %v2520_v36 }
 0xc3a   : > { %v2367_v53 = vmul.f32 %v2837_v51, %v2359_v50 }
 0xc3c   : > { %v2375_v58 = vadd.f32 %v2838_v54, %v2367_v53 }
 0xc66   : > { %v2352_v45 = vpop.xlane.xlu1 %2351 }
 0xc67   : > { %v2354_v18 = vmul.f32 0.03125, %v2352_v45 }
 0xc69   : > { %v2356_v46 = vadd.f32 1e-05, %v2354_v18 }
 0xc6b   : > { %3219 = vrsqrt.f32 %v2356_v46 }
 0xc75   : > { %v3220_v41 = vpop.eup %3219 }
 0xc76   : > { %v2360_v40 = vmul.f32 %v3220_v41, %v2344_v20 }
 0xc78   : > { %v2368_v56 = vmul.f32 %v2837_v51, %v2360_v40 }
 0xc7a   : > { %v2376_v61 = vadd.f32 %v2838_v54, %v2368_v56 }
 0xc7c   : > { %v2377_v1 = vpack.c.bf16 %v2376_v61, %v2375_v58 }
 0xc7e   : > { %3070 = vmatmul.mubr.msk.bf16.vlgmr.msra.gmra.mrb[0].mxu0 %vm884_vm1, %v2377_v1 }
 0xc7f   : > { %3082 = vmatpush3.bf16.msra.mxu0 %v3207_v63  ;;  %3085 = vmatprep.mubr.msk.bf16.mxu0 %vm3301_vm7, %v3300_v0 }
 0xc80   : > { %3083 = vmatprep.subr.bf16.mxu0 %v3300_v0 }
 0xc83   : > { %3084 = vmatpush3.bf16.msra.mxu0 %v3208_v2 }
 0xc86   : > { %3086 = vmatmul.mubr.msk.bf16.vlgmr.msra.gmra.mrb[4].mxu0 %vm884_vm1, %v2522_v38 }
 0xd51   : > { %v2431_v6 = vpop.f32.mrb[0].mxu0 }
 0xd52   : > { %2438 = vst [vmem:[#allocation3] sm:$0xff] %v2431_v6  ;;  %v3071_v57 = vpop.f32.mrb[1].mxu0 }
 0xd53   : > { %v2434_v7 = vpop.f32.mrb[2].mxu0 }
 0xd54   : > { %2439 = vst [vmem:[#allocation3 + $0x8] sm:$0xff] %v2434_v7  ;;  %v3072_v3 = vpop.f32.mrb[3].mxu0 }
 0xd59   : > { %v2583_v52 = vpop.f32.mrb[4].mxu0 }
 0xd5a   : > { %v2584_v5 = vadd.f32 %v2848_v59, %v2583_v52  ;;  %v3087_v4 = vpop.f32.mrb[5].mxu0 }
 0xd5b   : > { %v2586_v62 = vpop.f32.mrb[6].mxu0 }
 0xd5c   : > { %2590 = vst [vmem:[#allocation5] sm:$0xff] %v2584_v5  ;;  %v2587_v8 = vadd.f32 %v2848_v59, %v2586_v62  ;;  %v3088_v0 = vpop.f32.mrb[7].mxu0 }
 0xd5e   : > { %2591 = vst [vmem:[#allocation5 + $0x8] sm:$0xff] %v2587_v8 }
 0xd5f PF: > { %p3097_p6 = scmp.eq.s32.totalorder %s3431_s30, 1  ;;  %s3302_s6 = smov [#allocation3]  }
 0xd60   : > { %s2598_s7 = sshll.u32 %s3302_s6, 4  ;;  %s2599_s7 = int_to_ptr.vmem [resolvable:$true] %s2598_s7 }
 0xd61   : > { %s3221_s0 = scalar_lea.vmem %s2599_s7, 256  ;;  %p3228_p10 = scmp.lt.s32.totalorder %s2599_s7, %s2599_s7 }
 0xd62   : > { %p3222_p7 = scmp.ne.s32.totalorder %s2599_s7, %s3221_s0  ;;  %p3229_p11 = scmp.lt.s32.totalorder %s3221_s0, %s3221_s0 }
 0xd64   : > { %p3223_p8 = pnand %p3222_p7, %p3097_p6  ;;  %p3230_p12 = por %p3229_p11, %p3228_p10 }
 0xd66   : > { %p3224_p9 = pneg %p3223_p8 }
 0xd68   : > { %p3231_p13 = pnand %p3230_p12, %p3224_p9 }
 0xd6a   : > { %3234 = shalt.err (!%p3231_p13)
}
 0xd6b   : > { %s4004_s27 = sld [smem:[#allocation22_spill]] }
 0xd71   : > { %s3235_s24 = scalar_lea.hbm %s4004_s27, 256 }
 0xd72   : > { %p3236_p0 = scmp.ne.s32.totalorder %s4004_s27, %s3235_s24  ;;  %p3241_p3 = scmp.lt.u32.totalorder %s3235_s24, %s4004_s27 }
 0xd74   : > { %p3237_p1 = pnand %p3236_p0, %p3097_p6 }
 0xd76   : > { %p3238_p2 = pneg %p3237_p1 }
 0xd78   : > { %p3243_p4 = pnand %p3241_p3, %p3238_p2 }
 0xd7a   : > { %3246 = shalt.err (!%p3243_p4)
}
 0xd7b   : > { %s3303_s23 = smov 128   ;;  %s3304_s26 = smov [#allocation5]  }
 0xd7c   : > { %3090 = dma.vmem_to_hbm [thread:$0]  (%p3097_p6), %s2599_s7, 256, %s4004_s27, [#allocation4], %s3303_s23, %s3303_s23, %s3297_s22  }
 0xd7d   : > { %s2611_s5 = sshll.u32 %s3304_s26, 4  ;;  %s2612_s5 = int_to_ptr.vmem [resolvable:$true] %s2611_s5 }
 0xd7e   : > { %s3247_s6 = scalar_lea.vmem %s2612_s5, 256  ;;  %p3254_p9 = scmp.lt.s32.totalorder %s2612_s5, %s2612_s5 }
 0xd7f   : > { %p3248_p5 = scmp.ne.s32.totalorder %s2612_s5, %s3247_s6  ;;  %p3255_p10 = scmp.lt.s32.totalorder %s3247_s6, %s3247_s6 }
 0xd81   : > { %p3249_p7 = pnand %p3248_p5, %p3097_p6  ;;  %p3256_p11 = por %p3255_p10, %p3254_p9 }
 0xd83   : > { %p3250_p8 = pneg %p3249_p7 }
 0xd85   : > { %p3257_p12 = pnand %p3256_p11, %p3250_p8 }
 0xd87   : > { %3260 = shalt.err (!%p3257_p12)
}
 0xd88   : > { %s4005_s21 = sld [smem:[#allocation23_spill]] }
 0xd8e   : > { %s3261_s24 = scalar_lea.hbm %s4005_s21, 256 }
 0xd8f   : > { %p3262_p13 = scmp.ne.s32.totalorder %s4005_s21, %s3261_s24  ;;  %p3267_p2 = scmp.lt.u32.totalorder %s3261_s24, %s4005_s21 }
 0xd91   : > { %p3263_p0 = pnand %p3262_p13, %p3097_p6 }
 0xd93   : > { %p3264_p1 = pneg %p3263_p0 }
 0xd95   : > { %p3269_p3 = pnand %p3267_p2, %p3264_p1 }
 0xd97   : > { %3272 = shalt.err (!%p3269_p3)
}
 0xd98   : > { %3092 = dma.vmem_to_hbm [thread:$0]  (%p3097_p6), %s2612_s5, 256, %s4005_s21, [#allocation6], %s3303_s23, %s3303_s23, %s3297_s22  }
 0xd99   : > { %3278 = dma.done.wait (%p3097_p6), [#allocation4], 256  }
 0xd9a   : > { %3280 = vsyncadd (%p3097_p6), [#allocation4], 4294967040 }
 0xd9b   : > { %3282 = dma.done.wait (%p3097_p6), [#allocation6], 256  }
 0xd9c   : > { %3284 = vsyncadd (%p3097_p6), [#allocation6], 4294967040 }
 0xd9d PF: > { %s4006_s16 = sld [smem:[#allocation9_spill]] }
 0xda3   : > { %s36_s4 = sadd.s32 1, %s4006_s16  }
 0xda4   : > { %p33_p4 = scmp.ge.s32.totalorder %s36_s4, 4  }
 0xda6   :  { %35 = sbr.rel (!%p33_p4) target bundleno = 17 (0x11), region = 184 }
 0xdad   :  { %2631 = vsyncpa [#allocation4], 1 }
 0xdae   :  { %2633 = vsyncpa [#allocation4 + $0x1], 1 }
 0xdaf   :  { %2634 = vsyncpa [#allocation6], 1 }

</bundles_post_ra>
